<compile_context>
chip_gen: v6e
topology: v6e:2x2x1
jax: 0.10.0
libtpu: 0.0.40
codegen_flags: <defaults>
</compile_context>

<pallas_src>
import functools
import math

import jax
import jax.numpy as jnp
from jax.experimental import pallas as pl
from jax.experimental.pallas import tpu as pltpu

LN_EPS = 1e-5

_PAR = pltpu.CompilerParams(dimension_semantics=("parallel",))


def _tile_m(m, cap=256):
    """Row-tile size: whole array if small, else a multiple of 8 <= cap."""
    if m <= cap:
        return m
    for t in range(cap, 7, -8):
        if m % t == 0:
            return t
    return cap


# ----------------------------- Pallas kernels ------------------------------ #

def _qkv_self_kernel(x_ref, pos_ref, wq_ref, bq_ref, wk_ref, bk_ref,
                     wv_ref, bv_ref, q_ref, k_ref, v_ref):
    # Self-attention projections: q = k = (x + pos) @ W, v = x @ Wv.
    x = x_ref[...]
    xp = x + pos_ref[...]
    q_ref[...] = jnp.dot(xp, wq_ref[...],
                         preferred_element_type=jnp.float32) + bq_ref[...]
    k_ref[...] = jnp.dot(xp, wk_ref[...],
                         preferred_element_type=jnp.float32) + bk_ref[...]
    v_ref[...] = jnp.dot(x, wv_ref[...],
                         preferred_element_type=jnp.float32) + bv_ref[...]


def _q_proj_kernel(x_ref, pos_ref, w_ref, b_ref, o_ref):
    o_ref[...] = jnp.dot(x_ref[...] + pos_ref[...], w_ref[...],
                         preferred_element_type=jnp.float32) + b_ref[...]


def _kv_proj_kernel(x_ref, pos_ref, wk_ref, bk_ref, wv_ref, bv_ref,
                    k_ref, v_ref):
    # Cross-attention K/V projections: k = (mem + pos) @ Wk, v = mem @ Wv.
    x = x_ref[...]
    k_ref[...] = jnp.dot(x + pos_ref[...], wk_ref[...],
                         preferred_element_type=jnp.float32) + bk_ref[...]
    v_ref[...] = jnp.dot(x, wv_ref[...],
                         preferred_element_type=jnp.float32) + bv_ref[...]


def _mha_kernel(q_ref, k_ref, v_ref, o_ref, *, nhead, scale):
    # One batch element per grid step; all heads handled in-kernel so the
    # output store is lane-dense over E.
    q = q_ref[0]                                   # (Lq, E)
    k = k_ref[0]                                   # (Lk, E)
    v = v_ref[0]                                   # (Lk, E)
    dh = q.shape[-1] // nhead
    outs = []
    for h in range(nhead):
        sl = slice(h * dh, (h + 1) * dh)
        qh, kh, vh = q[:, sl], k[:, sl], v[:, sl]
        # contract over head dim without materializing k.T
        s = jax.lax.dot_general(qh, kh, (((1,), (1,)), ((), ())),
                                preferred_element_type=jnp.float32) * scale
        s = s - jnp.max(s, axis=-1, keepdims=True)
        p = jnp.exp(s)
        p = p * pl.reciprocal(jnp.sum(p, axis=-1, keepdims=True), approx=True)
        outs.append(jnp.dot(p, vh, preferred_element_type=jnp.float32))
    o_ref[0] = jnp.concatenate(outs, axis=-1)      # single lane-dense store


def _out_res_ln_kernel(a_ref, res_ref, w_ref, b_ref, g_ref, beta_ref, o_ref,
                       *, eps):
    # Fused: attention out-projection -> residual add -> LayerNorm (post-norm).
    y = jnp.dot(a_ref[...], w_ref[...],
                preferred_element_type=jnp.float32) + b_ref[...]
    y = res_ref[...] + y
    mu = jnp.mean(y, axis=-1, keepdims=True)
    var = jnp.mean((y - mu) ** 2, axis=-1, keepdims=True)
    o_ref[...] = (y - mu) * jax.lax.rsqrt(var + eps) * g_ref[...] + beta_ref[...]


def _ffn_kernel(x_ref, w1_ref, b1_ref, w2_ref, b2_ref, g_ref, bn_ref, o_ref,
                *, eps):
    # Fused: linear1 -> relu -> linear2 -> residual add -> LayerNorm.
    x = x_ref[...]
    h = jnp.maximum(
        jnp.dot(x, w1_ref[...], preferred_element_type=jnp.float32)
        + b1_ref[...], 0.0)
    y = jnp.dot(h, w2_ref[...], preferred_element_type=jnp.float32) + b2_ref[...]
    y = x + y
    mu = jnp.mean(y, axis=-1, keepdims=True)
    var = jnp.mean((y - mu) ** 2, axis=-1, keepdims=True)
    o_ref[...] = (y - mu) * jax.lax.rsqrt(var + eps) * g_ref[...] + bn_ref[...]


# ----------------------------- pallas_call wrappers ------------------------ #

def pallas_qkv_self(x, pos, p):
    """x, pos: (M, E) -> (q, k, v) each (M, E)."""
    M, E = x.shape
    tm = _tile_m(M)
    row = pl.BlockSpec((tm, E), lambda i: (i, 0))
    wsp = pl.BlockSpec((E, E), lambda i: (0, 0))
    bsp = pl.BlockSpec((1, E), lambda i: (0, 0))
    out = jax.ShapeDtypeStruct((M, E), jnp.float32)
    cost = pl.CostEstimate(flops=6 * M * E * E, transcendentals=0,
                           bytes_accessed=4 * (5 * M * E + 3 * E * E + 3 * E))
    return pl.pallas_call(
        _qkv_self_kernel,
        out_shape=(out, out, out),
        grid=(pl.cdiv(M, tm),),
        in_specs=[row, row, wsp, bsp, wsp, bsp, wsp, bsp],
        out_specs=(row, row, row),
        compiler_params=_PAR,
        cost_estimate=cost,
    )(x, pos, p["wq"], p["bq"], p["wk"], p["bk"], p["wv"], p["bv"])


def pallas_q_proj(x, pos, w, b):
    """q = (x + pos) @ w + b  with x, pos: (M, E)."""
    M, E = x.shape
    tm = _tile_m(M)
    row = pl.BlockSpec((tm, E), lambda i: (i, 0))
    return pl.pallas_call(
        _q_proj_kernel,
        out_shape=jax.ShapeDtypeStruct((M, E), jnp.float32),
        grid=(pl.cdiv(M, tm),),
        in_specs=[row, row,
                  pl.BlockSpec((E, E), lambda i: (0, 0)),
                  pl.BlockSpec((1, E), lambda i: (0, 0))],
        out_specs=row,
        compiler_params=_PAR,
    )(x, pos, w, b)


def pallas_kv_proj(x, pos, p):
    """k = (x + pos) @ Wk + bk,  v = x @ Wv + bv."""
    M, E = x.shape
    tm = _tile_m(M)
    row = pl.BlockSpec((tm, E), lambda i: (i, 0))
    wsp = pl.BlockSpec((E, E), lambda i: (0, 0))
    bsp = pl.BlockSpec((1, E), lambda i: (0, 0))
    out = jax.ShapeDtypeStruct((M, E), jnp.float32)
    return pl.pallas_call(
        _kv_proj_kernel,
        out_shape=(out, out),
        grid=(pl.cdiv(M, tm),),
        in_specs=[row, row, wsp, bsp, wsp, bsp],
        out_specs=(row, row),
        compiler_params=_PAR,
    )(x, pos, p["wk"], p["bk"], p["wv"], p["bv"])


def pallas_mha(q, k, v, nhead):
    """q: (B, Lq, E), k/v: (B, Lk, E) -> (B, Lq, E)."""
    B, Lq, E = q.shape
    Lk = k.shape[1]
    dh = E // nhead
    kern = functools.partial(_mha_kernel, nhead=nhead, scale=1.0 / math.sqrt(dh))
    cost = pl.CostEstimate(flops=4 * B * Lq * Lk * E,
                           transcendentals=B * nhead * Lq * Lk,
                           bytes_accessed=4 * (2 * B * Lq * E + 2 * B * Lk * E))
    # TODO(synk): for long sequences, tile Lq/Lk with an online-softmax
    # accumulator (flash-attention pattern) instead of full (Lq, Lk) scores.
    return pl.pallas_call(
        kern,
        out_shape=jax.ShapeDtypeStruct((B, Lq, E), jnp.float32),
        grid=(B,),
        in_specs=[
            pl.BlockSpec((1, Lq, E), lambda i: (i, 0, 0)),
            pl.BlockSpec((1, Lk, E), lambda i: (i, 0, 0)),
            pl.BlockSpec((1, Lk, E), lambda i: (i, 0, 0)),
        ],
        out_specs=pl.BlockSpec((1, Lq, E), lambda i: (i, 0, 0)),
        compiler_params=_PAR,
        cost_estimate=cost,
    )(q, k, v)


def pallas_out_res_ln(attn, residual, w, b, gamma, beta):
    """LayerNorm(residual + attn @ w + b)."""
    M, E = attn.shape
    tm = _tile_m(M)
    row = pl.BlockSpec((tm, E), lambda i: (i, 0))
    vec = pl.BlockSpec((1, E), lambda i: (0, 0))
    kern = functools.partial(_out_res_ln_kernel, eps=LN_EPS)
    return pl.pallas_call(
        kern,
        out_shape=jax.ShapeDtypeStruct((M, E), jnp.float32),
        grid=(pl.cdiv(M, tm),),
        in_specs=[row, row, pl.BlockSpec((E, E), lambda i: (0, 0)),
                  vec, vec, vec],
        out_specs=row,
        compiler_params=_PAR,
    )(attn, residual, w, b, gamma, beta)


def pallas_ffn(x, p):
    """Fused FFN + residual + LayerNorm on (M, E) rows."""
    M, E = x.shape
    Fd = p["w1"].shape[1]
    tm = _tile_m(M)
    row = pl.BlockSpec((tm, E), lambda i: (i, 0))
    kern = functools.partial(_ffn_kernel, eps=LN_EPS)
    cost = pl.CostEstimate(flops=4 * M * E * Fd, transcendentals=0,
                           bytes_accessed=4 * (2 * M * E + 2 * E * Fd + Fd + 3 * E))
    return pl.pallas_call(
        kern,
        out_shape=jax.ShapeDtypeStruct((M, E), jnp.float32),
        grid=(pl.cdiv(M, tm),),
        in_specs=[
            row,
            pl.BlockSpec((E, Fd), lambda i: (0, 0)),
            pl.BlockSpec((1, Fd), lambda i: (0, 0)),
            pl.BlockSpec((Fd, E), lambda i: (0, 0)),
            pl.BlockSpec((1, E), lambda i: (0, 0)),
            pl.BlockSpec((1, E), lambda i: (0, 0)),
            pl.BlockSpec((1, E), lambda i: (0, 0)),
        ],
        out_specs=row,
        compiler_params=_PAR,
        cost_estimate=cost,
    )(x, p["w1"], p["b1"], p["w2"], p["b2"], p["ln_g"], p["ln_b"])


# ----------------------------- Layer forward ------------------------------- #

@functools.partial(jax.jit, static_argnames=("nhead",))
def transformer_decoder_layer(tgt, memory, params, nhead, pos=None,
                              query_pos=None):
    """TransformerDecoderLayer.forward, normalize_before=False (post-norm),
    eval mode (dropout = identity).  tgt: (Lq, B, E), memory: (Lk, B, E)."""
    # TODO(synk): tgt_mask / memory_mask / key_padding_mask not implemented
    # (they are None in this setup).
    Lq, B, E = tgt.shape
    Lk = memory.shape[0]

    # (L, B, E) -> (B, L, E) once; everything below is lane-dense (rows, E).
    t = tgt.transpose(1, 0, 2)
    m = memory.transpose(1, 0, 2)
    qp = jnp.zeros_like(t) if query_pos is None else query_pos.transpose(1, 0, 2)
    mp = jnp.zeros_like(m) if pos is None else pos.transpose(1, 0, 2)

    t2 = t.reshape(B * Lq, E)
    qp2 = qp.reshape(B * Lq, E)
    m2 = m.reshape(B * Lk, E)
    mp2 = mp.reshape(B * Lk, E)

    # --- SelfAttentionLayer (forward_post) ---
    p = params["self_attn"]
    q2, k2, v2 = pallas_qkv_self(t2, qp2, p)
    a = pallas_mha(q2.reshape(B, Lq, E), k2.reshape(B, Lq, E),
                   v2.reshape(B, Lq, E), nhead)
    t2 = pallas_out_res_ln(a.reshape(B * Lq, E), t2, p["wo"], p["bo"],
                           p["ln_g"], p["ln_b"])

    # --- CrossAttentionLayer (forward_post) ---
    p = params["cross_attn"]
    q2 = pallas_q_proj(t2, qp2, p["wq"], p["bq"])
    k2, v2 = pallas_kv_proj(m2, mp2, p)
    a = pallas_mha(q2.reshape(B, Lq, E), k2.reshape(B, Lk, E),
                   v2.reshape(B, Lk, E), nhead)
    t2 = pallas_out_res_ln(a.reshape(B * Lq, E), t2, p["wo"], p["bo"],
                           p["ln_g"], p["ln_b"])

    # --- FeedForwardLayer (forward_post), fully fused ---
    t2 = pallas_ffn(t2, params["ffn"])

    return t2.reshape(B, Lq, E).transpose(1, 0, 2)


# ----------------------------- Parameters ---------------------------------- #

def init_params(key, d_model, nhead, dim_feedforward):
    """Parameters in PyTorch layout (in_proj (3E,E), linear weight (out,in))."""
    keys = jax.random.split(key, 10)

    def w(k, shape):
        return (jax.random.normal(k, shape, jnp.float32) * 0.02).astype(jnp.float32)

    def attn_params(k0, k1, k2, k3):
        return {
            "in_proj_w": w(k0, (3 * d_model, d_model)),
            "in_proj_b": w(k1, (3 * d_model,)),
            "out_proj_w": w(k2, (d_model, d_model)),
            "out_proj_b": w(k3, (d_model,)),
            "ln_g": jnp.ones((d_model,), jnp.float32),
            "ln_b": jnp.zeros((d_model,), jnp.float32),
        }

    return {
        "self_attn": attn_params(keys[0], keys[1], keys[2], keys[3]),
        "cross_attn": attn_params(keys[4], keys[5], keys[6], keys[7]),
        "ffn": {
            "w1": w(keys[8], (dim_feedforward, d_model)),
            "b1": jnp.zeros((dim_feedforward,), jnp.float32),
            "w2": w(keys[9], (d_model, dim_feedforward)),
            "b2": jnp.zeros((d_model,), jnp.float32),
            "ln_g": jnp.ones((d_model,), jnp.float32),
            "ln_b": jnp.zeros((d_model,), jnp.float32),
        },
    }


def prepare_params(raw):
    """One-time conversion: split QKV, transpose to (in, out), reshape biases."""
    def attn(p):
        wq, wk, wv = jnp.split(p["in_proj_w"], 3, axis=0)
        bq, bk, bv = jnp.split(p["in_proj_b"], 3, axis=0)
        E = wq.shape[1]
        return {
            "wq": wq.T, "bq": bq.reshape(1, E),
            "wk": wk.T, "bk": bk.reshape(1, E),
            "wv": wv.T, "bv": bv.reshape(1, E),
            "wo": p["out_proj_w"].T, "bo": p["out_proj_b"].reshape(1, E),
            "ln_g": p["ln_g"].reshape(1, E), "ln_b": p["ln_b"].reshape(1, E),
        }

    f = raw["ffn"]
    E = f["w2"].shape[0]
    Fd = f["w1"].shape[0]
    return {
        "self_attn": attn(raw["self_attn"]),
        "cross_attn": attn(raw["cross_attn"]),
        "ffn": {
            "w1": f["w1"].T, "b1": f["b1"].reshape(1, Fd),
            "w2": f["w2"].T, "b2": f["b2"].reshape(1, E),
            "ln_g": f["ln_g"].reshape(1, E), "ln_b": f["ln_b"].reshape(1, E),
        },
    }


# --------------------------------- Driver ---------------------------------- #

if __name__ == "__main__":
    d_model, nhead, dim_feedforward = 32, 4, 64
    tgt_len, mem_len, batch = 8, 16, 2

    key = jax.random.PRNGKey(0)
    k_p, k_t, k_m, k_qp, k_pos = jax.random.split(key, 5)

    params = prepare_params(init_params(k_p, d_model, nhead, dim_feedforward))
    tgt = jax.random.normal(k_t, (tgt_len, batch, d_model), jnp.float32)
    memory = jax.random.normal(k_m, (mem_len, batch, d_model), jnp.float32)
    query_pos = jax.random.normal(k_qp, (tgt_len, batch, d_model), jnp.float32)
    pos = jax.random.normal(k_pos, (mem_len, batch, d_model), jnp.float32)

    out = transformer_decoder_layer(tgt, memory, params, nhead, pos=pos,
                                    query_pos=query_pos)
    out = jax.block_until_ready(out)
    assert out.shape == (tgt_len, batch, d_model)
    assert jnp.all(jnp.isfinite(out))
    print("KERNEL_OK")
</pallas_src>

<mosaic_0001>
module attributes {stable_mosaic.version = 11 : i64} {
  func.func @_kv_proj_kernel(%arg0: i32, %arg1: memref<32x32xf32, #tpu.memory_space<vmem>>, %arg2: memref<32x32xf32, #tpu.memory_space<vmem>>, %arg3: memref<32x32xf32, #tpu.memory_space<vmem>>, %arg4: memref<1x32xf32, #tpu.memory_space<vmem>>, %arg5: memref<32x32xf32, #tpu.memory_space<vmem>>, %arg6: memref<1x32xf32, #tpu.memory_space<vmem>>, %arg7: memref<32x32xf32, #tpu.memory_space<vmem>>, %arg8: memref<32x32xf32, #tpu.memory_space<vmem>>) attributes {dimension_semantics = [#tpu.dimension_semantics<parallel>], iteration_bounds = array<i64: 1>, scalar_prefetch = 0 : i64, scratch_operands = 0 : i64, tpu.core_type = #tpu.core_type<tc>, window_params = [{transform_indices = @transform_0, window_bounds = array<i64: 32, 32>}, {transform_indices = @transform_1, window_bounds = array<i64: 32, 32>}, {pipeline_mode = #tpu.pipeline_mode<synchronous>, transform_indices = @transform_2, window_bounds = array<i64: 32, 32>}, {pipeline_mode = #tpu.pipeline_mode<synchronous>, transform_indices = @transform_3, window_bounds = array<i64: 1, 32>}, {pipeline_mode = #tpu.pipeline_mode<synchronous>, transform_indices = @transform_4, window_bounds = array<i64: 32, 32>}, {pipeline_mode = #tpu.pipeline_mode<synchronous>, transform_indices = @transform_5, window_bounds = array<i64: 1, 32>}, {transform_indices = @transform_6, window_bounds = array<i64: 32, 32>}, {transform_indices = @transform_7, window_bounds = array<i64: 32, 32>}]} {
    %c0 = arith.constant 0 : index
    %c0_0 = arith.constant 0 : index
    %0 = vector.load %arg1[%c0, %c0_0] : memref<32x32xf32, #tpu.memory_space<vmem>>, vector<32x32xf32>
    %c0_1 = arith.constant 0 : index
    %c0_2 = arith.constant 0 : index
    %1 = vector.load %arg2[%c0_1, %c0_2] : memref<32x32xf32, #tpu.memory_space<vmem>>, vector<32x32xf32>
    %2 = arith.addf %0, %1 : vector<32x32xf32>
    %c0_3 = arith.constant 0 : index
    %c0_4 = arith.constant 0 : index
    %3 = vector.load %arg3[%c0_3, %c0_4] : memref<32x32xf32, #tpu.memory_space<vmem>>, vector<32x32xf32>
    %cst = arith.constant dense<0.000000e+00> : vector<32x32xf32>
    %4 = tpu.matmul %2, %3, %cst {dimension_numbers = #tpu.dot_dimension_numbers<[1], [0], [0], [1], [0, 0, 1, 1], [], []>} : vector<32x32xf32>, vector<32x32xf32>, vector<32x32xf32> -> vector<32x32xf32>
    %c0_5 = arith.constant 0 : index
    %c0_6 = arith.constant 0 : index
    %5 = vector.load %arg4[%c0_5, %c0_6] : memref<1x32xf32, #tpu.memory_space<vmem>>, vector<1x32xf32>
    %6 = vector.broadcast %5 : vector<1x32xf32> to vector<32x32xf32>
    %7 = arith.addf %4, %6 : vector<32x32xf32>
    %c0_7 = arith.constant 0 : index
    %c0_8 = arith.constant 0 : index
    %8 = vector.load %arg7[%c0_7, %c0_8] : memref<32x32xf32, #tpu.memory_space<vmem>>, vector<32x32xf32>
    tpu.vector_store %arg7[%c0_7, %c0_8], %7 {strides = array<i32>} : memref<32x32xf32, #tpu.memory_space<vmem>>, vector<32x32xf32>,
    %c0_9 = arith.constant 0 : index
    %c0_10 = arith.constant 0 : index
    %9 = vector.load %arg5[%c0_9, %c0_10] : memref<32x32xf32, #tpu.memory_space<vmem>>, vector<32x32xf32>
    %cst_11 = arith.constant dense<0.000000e+00> : vector<32x32xf32>
    %10 = tpu.matmul %0, %9, %cst_11 {dimension_numbers = #tpu.dot_dimension_numbers<[1], [0], [0], [1], [0, 0, 1, 1], [], []>} : vector<32x32xf32>, vector<32x32xf32>, vector<32x32xf32> -> vector<32x32xf32>
    %c0_12 = arith.constant 0 : index
    %c0_13 = arith.constant 0 : index
    %11 = vector.load %arg6[%c0_12, %c0_13] : memref<1x32xf32, #tpu.memory_space<vmem>>, vector<1x32xf32>
    %12 = vector.broadcast %11 : vector<1x32xf32> to vector<32x32xf32>
    %13 = arith.addf %10, %12 : vector<32x32xf32>
    %c0_14 = arith.constant 0 : index
    %c0_15 = arith.constant 0 : index
    %14 = vector.load %arg8[%c0_14, %c0_15] : memref<32x32xf32, #tpu.memory_space<vmem>>, vector<32x32xf32>
    tpu.vector_store %arg8[%c0_14, %c0_15], %13 {strides = array<i32>} : memref<32x32xf32, #tpu.memory_space<vmem>>, vector<32x32xf32>,
    return
  }
  func.func @transform_0(%arg0: i32) -> (i32, i32) {
    %c0_i32 = arith.constant 0 : i32
    %c0_i32_0 = arith.constant 0 : i32
    return %arg0, %c0_i32 : i32, i32
  }
  func.func @transform_1(%arg0: i32) -> (i32, i32) {
    %c0_i32 = arith.constant 0 : i32
    %c0_i32_0 = arith.constant 0 : i32
    return %arg0, %c0_i32 : i32, i32
  }
  func.func @transform_2(%arg0: i32) -> (i32, i32) {
    %c0_i32 = arith.constant 0 : i32
    %c0_i32_0 = arith.constant 0 : i32
    %c0_i32_1 = arith.constant 0 : i32
    return %c0_i32, %c0_i32_0 : i32, i32
  }
  func.func @transform_3(%arg0: i32) -> (i32, i32) {
    %c0_i32 = arith.constant 0 : i32
    %c0_i32_0 = arith.constant 0 : i32
    %c0_i32_1 = arith.constant 0 : i32
    return %c0_i32, %c0_i32_0 : i32, i32
  }
  func.func @transform_4(%arg0: i32) -> (i32, i32) {
    %c0_i32 = arith.constant 0 : i32
    %c0_i32_0 = arith.constant 0 : i32
    %c0_i32_1 = arith.constant 0 : i32
    return %c0_i32, %c0_i32_0 : i32, i32
  }
  func.func @transform_5(%arg0: i32) -> (i32, i32) {
    %c0_i32 = arith.constant 0 : i32
    %c0_i32_0 = arith.constant 0 : i32
    %c0_i32_1 = arith.constant 0 : i32
    return %c0_i32, %c0_i32_0 : i32, i32
  }
  func.func @transform_6(%arg0: i32) -> (i32, i32) {
    %c0_i32 = arith.constant 0 : i32
    %c0_i32_0 = arith.constant 0 : i32
    return %arg0, %c0_i32 : i32, i32
  }
  func.func @transform_7(%arg0: i32) -> (i32, i32) {
    %c0_i32 = arith.constant 0 : i32
    %c0_i32_0 = arith.constant 0 : i32
    return %arg0, %c0_i32 : i32, i32
  }
}

module attributes {stable_mosaic.version = 11 : i64} {
  func.func @_mha_kernel(%arg0: i32, %arg1: memref<1x8x32xf32, #tpu.memory_space<vmem>>, %arg2: memref<1x8x32xf32, #tpu.memory_space<vmem>>, %arg3: memref<1x8x32xf32, #tpu.memory_space<vmem>>, %arg4: memref<1x8x32xf32, #tpu.memory_space<vmem>>) attributes {dimension_semantics = [#tpu.dimension_semantics<parallel>], iteration_bounds = array<i64: 2>, scalar_prefetch = 0 : i64, scratch_operands = 0 : i64, tpu.core_type = #tpu.core_type<tc>, window_params = [{transform_indices = @transform_0, window_bounds = array<i64: 1, 8, 32>}, {transform_indices = @transform_1, window_bounds = array<i64: 1, 8, 32>}, {transform_indices = @transform_2, window_bounds = array<i64: 1, 8, 32>}, {transform_indices = @transform_3, window_bounds = array<i64: 1, 8, 32>}]} {
    %c0 = arith.constant 0 : index
    %c0_0 = arith.constant 0 : index
    %c0_1 = arith.constant 0 : index
    %0 = vector.load %arg1[%c0, %c0_0, %c0_1] : memref<1x8x32xf32, #tpu.memory_space<vmem>>, vector<1x8x32xf32>
    %1 = vector.shape_cast %0 : vector<1x8x32xf32> to vector<8x32xf32>
    %c0_2 = arith.constant 0 : index
    %c0_3 = arith.constant 0 : index
    %c0_4 = arith.constant 0 : index
    %2 = vector.load %arg2[%c0_2, %c0_3, %c0_4] : memref<1x8x32xf32, #tpu.memory_space<vmem>>, vector<1x8x32xf32>
    %3 = vector.shape_cast %2 : vector<1x8x32xf32> to vector<8x32xf32>
    %c0_5 = arith.constant 0 : index
    %c0_6 = arith.constant 0 : index
    %c0_7 = arith.constant 0 : index
    %4 = vector.load %arg3[%c0_5, %c0_6, %c0_7] : memref<1x8x32xf32, #tpu.memory_space<vmem>>, vector<1x8x32xf32>
    %5 = vector.shape_cast %4 : vector<1x8x32xf32> to vector<8x32xf32>
    %6 = vector.extract_strided_slice %1 {offsets = [0, 0], sizes = [8, 8], strides = [1, 1]} : vector<8x32xf32> to vector<8x8xf32>
    %7 = vector.extract_strided_slice %3 {offsets = [0, 0], sizes = [8, 8], strides = [1, 1]} : vector<8x32xf32> to vector<8x8xf32>
    %8 = vector.extract_strided_slice %5 {offsets = [0, 0], sizes = [8, 8], strides = [1, 1]} : vector<8x32xf32> to vector<8x8xf32>
    %cst = arith.constant dense<0.000000e+00> : vector<8x8xf32>
    %9 = tpu.matmul %6, %7, %cst {dimension_numbers = #tpu.dot_dimension_numbers<[1], [1], [0], [0], [0, 0, 1, 0], [], []>} : vector<8x8xf32>, vector<8x8xf32>, vector<8x8xf32> -> vector<8x8xf32>
    %cst_8 = arith.constant 0.353553385 : f32
    %10 = vector.broadcast %cst_8 : f32 to vector<8x8xf32>
    %11 = arith.mulf %9, %10 : vector<8x8xf32>
    %cst_9 = arith.constant dense<0xFF800000> : vector<8xf32>
    %12 = vector.multi_reduction <maximumf>, %11, %cst_9 [1] : vector<8x8xf32> to vector<8xf32>
    %13 = vector.shape_cast %12 : vector<8xf32> to vector<8x1xf32>
    %14 = vector.broadcast %13 : vector<8x1xf32> to vector<8x8xf32>
    %15 = arith.subf %11, %14 : vector<8x8xf32>
    %16 = math.exp %15 : vector<8x8xf32>
    %cst_10 = arith.constant dense<0.000000e+00> : vector<8xf32>
    %17 = vector.multi_reduction <add>, %16, %cst_10 [1] : vector<8x8xf32> to vector<8xf32>
    %18 = vector.shape_cast %17 : vector<8xf32> to vector<8x1xf32>
    %19 = tpu.reciprocal %18 {approx = true} : vector<8x1xf32> -> vector<8x1xf32>
    %20 = vector.broadcast %19 : vector<8x1xf32> to vector<8x8xf32>
    %21 = arith.mulf %16, %20 : vector<8x8xf32>
    %cst_11 = arith.constant dense<0.000000e+00> : vector<8x8xf32>
    %22 = tpu.matmul %21, %8, %cst_11 {dimension_numbers = #tpu.dot_dimension_numbers<[1], [0], [0], [1], [0, 0, 1, 1], [], []>} : vector<8x8xf32>, vector<8x8xf32>, vector<8x8xf32> -> vector<8x8xf32>
    %23 = vector.extract_strided_slice %1 {offsets = [0, 8], sizes = [8, 8], strides = [1, 1]} : vector<8x32xf32> to vector<8x8xf32>
    %24 = vector.extract_strided_slice %3 {offsets = [0, 8], sizes = [8, 8], strides = [1, 1]} : vector<8x32xf32> to vector<8x8xf32>
    %25 = vector.extract_strided_slice %5 {offsets = [0, 8], sizes = [8, 8], strides = [1, 1]} : vector<8x32xf32> to vector<8x8xf32>
    %cst_12 = arith.constant dense<0.000000e+00> : vector<8x8xf32>
    %26 = tpu.matmul %23, %24, %cst_12 {dimension_numbers = #tpu.dot_dimension_numbers<[1], [1], [0], [0], [0, 0, 1, 0], [], []>} : vector<8x8xf32>, vector<8x8xf32>, vector<8x8xf32> -> vector<8x8xf32>
    %cst_13 = arith.constant 0.353553385 : f32
    %27 = vector.broadcast %cst_13 : f32 to vector<8x8xf32>
    %28 = arith.mulf %26, %27 : vector<8x8xf32>
    %cst_14 = arith.constant dense<0xFF800000> : vector<8xf32>
    %29 = vector.multi_reduction <maximumf>, %28, %cst_14 [1] : vector<8x8xf32> to vector<8xf32>
    %30 = vector.shape_cast %29 : vector<8xf32> to vector<8x1xf32>
    %31 = vector.broadcast %30 : vector<8x1xf32> to vector<8x8xf32>
    %32 = arith.subf %28, %31 : vector<8x8xf32>
    %33 = math.exp %32 : vector<8x8xf32>
    %cst_15 = arith.constant dense<0.000000e+00> : vector<8xf32>
    %34 = vector.multi_reduction <add>, %33, %cst_15 [1] : vector<8x8xf32> to vector<8xf32>
    %35 = vector.shape_cast %34 : vector<8xf32> to vector<8x1xf32>
    %36 = tpu.reciprocal %35 {approx = true} : vector<8x1xf32> -> vector<8x1xf32>
    %37 = vector.broadcast %36 : vector<8x1xf32> to vector<8x8xf32>
    %38 = arith.mulf %33, %37 : vector<8x8xf32>
    %cst_16 = arith.constant dense<0.000000e+00> : vector<8x8xf32>
    %39 = tpu.matmul %38, %25, %cst_16 {dimension_numbers = #tpu.dot_dimension_numbers<[1], [0], [0], [1], [0, 0, 1, 1], [], []>} : vector<8x8xf32>, vector<8x8xf32>, vector<8x8xf32> -> vector<8x8xf32>
    %40 = vector.extract_strided_slice %1 {offsets = [0, 16], sizes = [8, 8], strides = [1, 1]} : vector<8x32xf32> to vector<8x8xf32>
    %41 = vector.extract_strided_slice %3 {offsets = [0, 16], sizes = [8, 8], strides = [1, 1]} : vector<8x32xf32> to vector<8x8xf32>
    %42 = vector.extract_strided_slice %5 {offsets = [0, 16], sizes = [8, 8], strides = [1, 1]} : vector<8x32xf32> to vector<8x8xf32>
    %cst_17 = arith.constant dense<0.000000e+00> : vector<8x8xf32>
    %43 = tpu.matmul %40, %41, %cst_17 {dimension_numbers = #tpu.dot_dimension_numbers<[1], [1], [0], [0], [0, 0, 1, 0], [], []>} : vector<8x8xf32>, vector<8x8xf32>, vector<8x8xf32> -> vector<8x8xf32>
    %cst_18 = arith.constant 0.353553385 : f32
    %44 = vector.broadcast %cst_18 : f32 to vector<8x8xf32>
    %45 = arith.mulf %43, %44 : vector<8x8xf32>
    %cst_19 = arith.constant dense<0xFF800000> : vector<8xf32>
    %46 = vector.multi_reduction <maximumf>, %45, %cst_19 [1] : vector<8x8xf32> to vector<8xf32>
    %47 = vector.shape_cast %46 : vector<8xf32> to vector<8x1xf32>
    %48 = vector.broadcast %47 : vector<8x1xf32> to vector<8x8xf32>
    %49 = arith.subf %45, %48 : vector<8x8xf32>
    %50 = math.exp %49 : vector<8x8xf32>
    %cst_20 = arith.constant dense<0.000000e+00> : vector<8xf32>
    %51 = vector.multi_reduction <add>, %50, %cst_20 [1] : vector<8x8xf32> to vector<8xf32>
    %52 = vector.shape_cast %51 : vector<8xf32> to vector<8x1xf32>
    %53 = tpu.reciprocal %52 {approx = true} : vector<8x1xf32> -> vector<8x1xf32>
    %54 = vector.broadcast %53 : vector<8x1xf32> to vector<8x8xf32>
    %55 = arith.mulf %50, %54 : vector<8x8xf32>
    %cst_21 = arith.constant dense<0.000000e+00> : vector<8x8xf32>
    %56 = tpu.matmul %55, %42, %cst_21 {dimension_numbers = #tpu.dot_dimension_numbers<[1], [0], [0], [1], [0, 0, 1, 1], [], []>} : vector<8x8xf32>, vector<8x8xf32>, vector<8x8xf32> -> vector<8x8xf32>
    %57 = vector.extract_strided_slice %1 {offsets = [0, 24], sizes = [8, 8], strides = [1, 1]} : vector<8x32xf32> to vector<8x8xf32>
    %58 = vector.extract_strided_slice %3 {offsets = [0, 24], sizes = [8, 8], strides = [1, 1]} : vector<8x32xf32> to vector<8x8xf32>
    %59 = vector.extract_strided_slice %5 {offsets = [0, 24], sizes = [8, 8], strides = [1, 1]} : vector<8x32xf32> to vector<8x8xf32>
    %cst_22 = arith.constant dense<0.000000e+00> : vector<8x8xf32>
    %60 = tpu.matmul %57, %58, %cst_22 {dimension_numbers = #tpu.dot_dimension_numbers<[1], [1], [0], [0], [0, 0, 1, 0], [], []>} : vector<8x8xf32>, vector<8x8xf32>, vector<8x8xf32> -> vector<8x8xf32>
    %cst_23 = arith.constant 0.353553385 : f32
    %61 = vector.broadcast %cst_23 : f32 to vector<8x8xf32>
    %62 = arith.mulf %60, %61 : vector<8x8xf32>
    %cst_24 = arith.constant dense<0xFF800000> : vector<8xf32>
    %63 = vector.multi_reduction <maximumf>, %62, %cst_24 [1] : vector<8x8xf32> to vector<8xf32>
    %64 = vector.shape_cast %63 : vector<8xf32> to vector<8x1xf32>
    %65 = vector.broadcast %64 : vector<8x1xf32> to vector<8x8xf32>
    %66 = arith.subf %62, %65 : vector<8x8xf32>
    %67 = math.exp %66 : vector<8x8xf32>
    %cst_25 = arith.constant dense<0.000000e+00> : vector<8xf32>
    %68 = vector.multi_reduction <add>, %67, %cst_25 [1] : vector<8x8xf32> to vector<8xf32>
    %69 = vector.shape_cast %68 : vector<8xf32> to vector<8x1xf32>
    %70 = tpu.reciprocal %69 {approx = true} : vector<8x1xf32> -> vector<8x1xf32>
    %71 = vector.broadcast %70 : vector<8x1xf32> to vector<8x8xf32>
    %72 = arith.mulf %67, %71 : vector<8x8xf32>
    %cst_26 = arith.constant dense<0.000000e+00> : vector<8x8xf32>
    %73 = tpu.matmul %72, %59, %cst_26 {dimension_numbers = #tpu.dot_dimension_numbers<[1], [0], [0], [1], [0, 0, 1, 1], [], []>} : vector<8x8xf32>, vector<8x8xf32>, vector<8x8xf32> -> vector<8x8xf32>
    %74 = tpu.concatenate %22, %39, %56, %73 in 1 : vector<8x8xf32>, vector<8x8xf32>, vector<8x8xf32>, vector<8x8xf32> -> vector<8x32xf32>
    %c0_27 = arith.constant 0 : index
    %c0_28 = arith.constant 0 : index
    %c0_29 = arith.constant 0 : index
    %75 = vector.load %arg4[%c0_27, %c0_28, %c0_29] : memref<1x8x32xf32, #tpu.memory_space<vmem>>, vector<1x8x32xf32>
    %76 = vector.shape_cast %75 : vector<1x8x32xf32> to vector<8x32xf32>
    %77 = vector.shape_cast %74 : vector<8x32xf32> to vector<1x8x32xf32>
    tpu.vector_store %arg4[%c0_27, %c0_28, %c0_29], %77 {strides = array<i32>} : memref<1x8x32xf32, #tpu.memory_space<vmem>>, vector<1x8x32xf32>,
    return
  }
  func.func @transform_0(%arg0: i32) -> (i32, i32, i32) {
    %c0_i32 = arith.constant 0 : i32
    %c0_i32_0 = arith.constant 0 : i32
    %c0_i32_1 = arith.constant 0 : i32
    return %arg0, %c0_i32, %c0_i32_0 : i32, i32, i32
  }
  func.func @transform_1(%arg0: i32) -> (i32, i32, i32) {
    %c0_i32 = arith.constant 0 : i32
    %c0_i32_0 = arith.constant 0 : i32
    %c0_i32_1 = arith.constant 0 : i32
    return %arg0, %c0_i32, %c0_i32_0 : i32, i32, i32
  }
  func.func @transform_2(%arg0: i32) -> (i32, i32, i32) {
    %c0_i32 = arith.constant 0 : i32
    %c0_i32_0 = arith.constant 0 : i32
    %c0_i32_1 = arith.constant 0 : i32
    return %arg0, %c0_i32, %c0_i32_0 : i32, i32, i32
  }
  func.func @transform_3(%arg0: i32) -> (i32, i32, i32) {
    %c0_i32 = arith.constant 0 : i32
    %c0_i32_0 = arith.constant 0 : i32
    %c0_i32_1 = arith.constant 0 : i32
    return %arg0, %c0_i32, %c0_i32_0 : i32, i32, i32
  }
}

module attributes {stable_mosaic.version = 11 : i64} {
  func.func @_out_res_ln_kernel(%arg0: i32, %arg1: memref<16x32xf32, #tpu.memory_space<vmem>>, %arg2: memref<16x32xf32, #tpu.memory_space<vmem>>, %arg3: memref<32x32xf32, #tpu.memory_space<vmem>>, %arg4: memref<1x32xf32, #tpu.memory_space<vmem>>, %arg5: memref<1x32xf32, #tpu.memory_space<vmem>>, %arg6: memref<1x32xf32, #tpu.memory_space<vmem>>, %arg7: memref<16x32xf32, #tpu.memory_space<vmem>>) attributes {dimension_semantics = [#tpu.dimension_semantics<parallel>], iteration_bounds = array<i64: 1>, scalar_prefetch = 0 : i64, scratch_operands = 0 : i64, tpu.core_type = #tpu.core_type<tc>, window_params = [{transform_indices = @transform_0, window_bounds = array<i64: 16, 32>}, {transform_indices = @transform_1, window_bounds = array<i64: 16, 32>}, {pipeline_mode = #tpu.pipeline_mode<synchronous>, transform_indices = @transform_2, window_bounds = array<i64: 32, 32>}, {pipeline_mode = #tpu.pipeline_mode<synchronous>, transform_indices = @transform_3, window_bounds = array<i64: 1, 32>}, {pipeline_mode = #tpu.pipeline_mode<synchronous>, transform_indices = @transform_4, window_bounds = array<i64: 1, 32>}, {pipeline_mode = #tpu.pipeline_mode<synchronous>, transform_indices = @transform_5, window_bounds = array<i64: 1, 32>}, {transform_indices = @transform_6, window_bounds = array<i64: 16, 32>}]} {
    %c0 = arith.constant 0 : index
    %c0_0 = arith.constant 0 : index
    %0 = vector.load %arg1[%c0, %c0_0] : memref<16x32xf32, #tpu.memory_space<vmem>>, vector<16x32xf32>
    %c0_1 = arith.constant 0 : index
    %c0_2 = arith.constant 0 : index
    %1 = vector.load %arg3[%c0_1, %c0_2] : memref<32x32xf32, #tpu.memory_space<vmem>>, vector<32x32xf32>
    %cst = arith.constant dense<0.000000e+00> : vector<16x32xf32>
    %2 = tpu.matmul %0, %1, %cst {dimension_numbers = #tpu.dot_dimension_numbers<[1], [0], [0], [1], [0, 0, 1, 1], [], []>} : vector<16x32xf32>, vector<32x32xf32>, vector<16x32xf32> -> vector<16x32xf32>
    %c0_3 = arith.constant 0 : index
    %c0_4 = arith.constant 0 : index
    %3 = vector.load %arg4[%c0_3, %c0_4] : memref<1x32xf32, #tpu.memory_space<vmem>>, vector<1x32xf32>
    %4 = vector.broadcast %3 : vector<1x32xf32> to vector<16x32xf32>
    %5 = arith.addf %2, %4 : vector<16x32xf32>
    %c0_5 = arith.constant 0 : index
    %c0_6 = arith.constant 0 : index
    %6 = vector.load %arg2[%c0_5, %c0_6] : memref<16x32xf32, #tpu.memory_space<vmem>>, vector<16x32xf32>
    %7 = arith.addf %6, %5 : vector<16x32xf32>
    %cst_7 = arith.constant dense<0.000000e+00> : vector<16xf32>
    %8 = vector.multi_reduction <add>, %7, %cst_7 [1] : vector<16x32xf32> to vector<16xf32>
    %9 = vector.shape_cast %8 : vector<16xf32> to vector<16x1xf32>
    %cst_8 = arith.constant 3.200000e+01 : f32
    %10 = vector.broadcast %cst_8 : f32 to vector<16x1xf32>
    %11 = arith.divf %9, %10 : vector<16x1xf32>
    %12 = vector.broadcast %11 : vector<16x1xf32> to vector<16x32xf32>
    %13 = arith.subf %7, %12 : vector<16x32xf32>
    %14 = arith.mulf %13, %13 : vector<16x32xf32>
    %cst_9 = arith.constant dense<0.000000e+00> : vector<16xf32>
    %15 = vector.multi_reduction <add>, %14, %cst_9 [1] : vector<16x32xf32> to vector<16xf32>
    %16 = vector.shape_cast %15 : vector<16xf32> to vector<16x1xf32>
    %cst_10 = arith.constant 3.200000e+01 : f32
    %17 = vector.broadcast %cst_10 : f32 to vector<16x1xf32>
    %18 = arith.divf %16, %17 : vector<16x1xf32>
    %19 = vector.broadcast %11 : vector<16x1xf32> to vector<16x32xf32>
    %20 = arith.subf %7, %19 : vector<16x32xf32>
    %cst_11 = arith.constant 9.99999974E-6 : f32
    %21 = vector.broadcast %cst_11 : f32 to vector<16x1xf32>
    %22 = arith.addf %18, %21 : vector<16x1xf32>
    %23 = math.rsqrt %22 : vector<16x1xf32>
    %24 = vector.broadcast %23 : vector<16x1xf32> to vector<16x32xf32>
    %25 = arith.mulf %20, %24 : vector<16x32xf32>
    %c0_12 = arith.constant 0 : index
    %c0_13 = arith.constant 0 : index
    %26 = vector.load %arg5[%c0_12, %c0_13] : memref<1x32xf32, #tpu.memory_space<vmem>>, vector<1x32xf32>
    %27 = vector.broadcast %26 : vector<1x32xf32> to vector<16x32xf32>
    %28 = arith.mulf %25, %27 : vector<16x32xf32>
    %c0_14 = arith.constant 0 : index
    %c0_15 = arith.constant 0 : index
    %29 = vector.load %arg6[%c0_14, %c0_15] : memref<1x32xf32, #tpu.memory_space<vmem>>, vector<1x32xf32>
    %30 = vector.broadcast %29 : vector<1x32xf32> to vector<16x32xf32>
    %31 = arith.addf %28, %30 : vector<16x32xf32>
    %c0_16 = arith.constant 0 : index
    %c0_17 = arith.constant 0 : index
    %32 = vector.load %arg7[%c0_16, %c0_17] : memref<16x32xf32, #tpu.memory_space<vmem>>, vector<16x32xf32>
    tpu.vector_store %arg7[%c0_16, %c0_17], %31 {strides = array<i32>} : memref<16x32xf32, #tpu.memory_space<vmem>>, vector<16x32xf32>,
    return
  }
  func.func @transform_0(%arg0: i32) -> (i32, i32) {
    %c0_i32 = arith.constant 0 : i32
    %c0_i32_0 = arith.constant 0 : i32
    return %arg0, %c0_i32 : i32, i32
  }
  func.func @transform_1(%arg0: i32) -> (i32, i32) {
    %c0_i32 = arith.constant 0 : i32
    %c0_i32_0 = arith.constant 0 : i32
    return %arg0, %c0_i32 : i32, i32
  }
  func.func @transform_2(%arg0: i32) -> (i32, i32) {
    %c0_i32 = arith.constant 0 : i32
    %c0_i32_0 = arith.constant 0 : i32
    %c0_i32_1 = arith.constant 0 : i32
    return %c0_i32, %c0_i32_0 : i32, i32
  }
  func.func @transform_3(%arg0: i32) -> (i32, i32) {
    %c0_i32 = arith.constant 0 : i32
    %c0_i32_0 = arith.constant 0 : i32
    %c0_i32_1 = arith.constant 0 : i32
    return %c0_i32, %c0_i32_0 : i32, i32
  }
  func.func @transform_4(%arg0: i32) -> (i32, i32) {
    %c0_i32 = arith.constant 0 : i32
    %c0_i32_0 = arith.constant 0 : i32
    %c0_i32_1 = arith.constant 0 : i32
    return %c0_i32, %c0_i32_0 : i32, i32
  }
  func.func @transform_5(%arg0: i32) -> (i32, i32) {
    %c0_i32 = arith.constant 0 : i32
    %c0_i32_0 = arith.constant 0 : i32
    %c0_i32_1 = arith.constant 0 : i32
    return %c0_i32, %c0_i32_0 : i32, i32
  }
  func.func @transform_6(%arg0: i32) -> (i32, i32) {
    %c0_i32 = arith.constant 0 : i32
    %c0_i32_0 = arith.constant 0 : i32
    return %arg0, %c0_i32 : i32, i32
  }
}

module attributes {stable_mosaic.version = 11 : i64} {
  func.func @_qkv_self_kernel(%arg0: i32, %arg1: memref<16x32xf32, #tpu.memory_space<vmem>>, %arg2: memref<16x32xf32, #tpu.memory_space<vmem>>, %arg3: memref<32x32xf32, #tpu.memory_space<vmem>>, %arg4: memref<1x32xf32, #tpu.memory_space<vmem>>, %arg5: memref<32x32xf32, #tpu.memory_space<vmem>>, %arg6: memref<1x32xf32, #tpu.memory_space<vmem>>, %arg7: memref<32x32xf32, #tpu.memory_space<vmem>>, %arg8: memref<1x32xf32, #tpu.memory_space<vmem>>, %arg9: memref<16x32xf32, #tpu.memory_space<vmem>>, %arg10: memref<16x32xf32, #tpu.memory_space<vmem>>, %arg11: memref<16x32xf32, #tpu.memory_space<vmem>>) attributes {dimension_semantics = [#tpu.dimension_semantics<parallel>], iteration_bounds = array<i64: 1>, scalar_prefetch = 0 : i64, scratch_operands = 0 : i64, tpu.core_type = #tpu.core_type<tc>, window_params = [{transform_indices = @transform_0, window_bounds = array<i64: 16, 32>}, {transform_indices = @transform_1, window_bounds = array<i64: 16, 32>}, {pipeline_mode = #tpu.pipeline_mode<synchronous>, transform_indices = @transform_2, window_bounds = array<i64: 32, 32>}, {pipeline_mode = #tpu.pipeline_mode<synchronous>, transform_indices = @transform_3, window_bounds = array<i64: 1, 32>}, {pipeline_mode = #tpu.pipeline_mode<synchronous>, transform_indices = @transform_4, window_bounds = array<i64: 32, 32>}, {pipeline_mode = #tpu.pipeline_mode<synchronous>, transform_indices = @transform_5, window_bounds = array<i64: 1, 32>}, {pipeline_mode = #tpu.pipeline_mode<synchronous>, transform_indices = @transform_6, window_bounds = array<i64: 32, 32>}, {pipeline_mode = #tpu.pipeline_mode<synchronous>, transform_indices = @transform_7, window_bounds = array<i64: 1, 32>}, {transform_indices = @transform_8, window_bounds = array<i64: 16, 32>}, {transform_indices = @transform_9, window_bounds = array<i64: 16, 32>}, {transform_indices = @transform_10, window_bounds = array<i64: 16, 32>}]} {
    %c0 = arith.constant 0 : index
    %c0_0 = arith.constant 0 : index
    %0 = vector.load %arg1[%c0, %c0_0] : memref<16x32xf32, #tpu.memory_space<vmem>>, vector<16x32xf32>
    %c0_1 = arith.constant 0 : index
    %c0_2 = arith.constant 0 : index
    %1 = vector.load %arg2[%c0_1, %c0_2] : memref<16x32xf32, #tpu.memory_space<vmem>>, vector<16x32xf32>
    %2 = arith.addf %0, %1 : vector<16x32xf32>
    %c0_3 = arith.constant 0 : index
    %c0_4 = arith.constant 0 : index
    %3 = vector.load %arg3[%c0_3, %c0_4] : memref<32x32xf32, #tpu.memory_space<vmem>>, vector<32x32xf32>
    %cst = arith.constant dense<0.000000e+00> : vector<16x32xf32>
    %4 = tpu.matmul %2, %3, %cst {dimension_numbers = #tpu.dot_dimension_numbers<[1], [0], [0], [1], [0, 0, 1, 1], [], []>} : vector<16x32xf32>, vector<32x32xf32>, vector<16x32xf32> -> vector<16x32xf32>
    %c0_5 = arith.constant 0 : index
    %c0_6 = arith.constant 0 : index
    %5 = vector.load %arg4[%c0_5, %c0_6] : memref<1x32xf32, #tpu.memory_space<vmem>>, vector<1x32xf32>
    %6 = vector.broadcast %5 : vector<1x32xf32> to vector<16x32xf32>
    %7 = arith.addf %4, %6 : vector<16x32xf32>
    %c0_7 = arith.constant 0 : index
    %c0_8 = arith.constant 0 : index
    %8 = vector.load %arg9[%c0_7, %c0_8] : memref<16x32xf32, #tpu.memory_space<vmem>>, vector<16x32xf32>
    tpu.vector_store %arg9[%c0_7, %c0_8], %7 {strides = array<i32>} : memref<16x32xf32, #tpu.memory_space<vmem>>, vector<16x32xf32>,
    %c0_9 = arith.constant 0 : index
    %c0_10 = arith.constant 0 : index
    %9 = vector.load %arg5[%c0_9, %c0_10] : memref<32x32xf32, #tpu.memory_space<vmem>>, vector<32x32xf32>
    %cst_11 = arith.constant dense<0.000000e+00> : vector<16x32xf32>
    %10 = tpu.matmul %2, %9, %cst_11 {dimension_numbers = #tpu.dot_dimension_numbers<[1], [0], [0], [1], [0, 0, 1, 1], [], []>} : vector<16x32xf32>, vector<32x32xf32>, vector<16x32xf32> -> vector<16x32xf32>
    %c0_12 = arith.constant 0 : index
    %c0_13 = arith.constant 0 : index
    %11 = vector.load %arg6[%c0_12, %c0_13] : memref<1x32xf32, #tpu.memory_space<vmem>>, vector<1x32xf32>
    %12 = vector.broadcast %11 : vector<1x32xf32> to vector<16x32xf32>
    %13 = arith.addf %10, %12 : vector<16x32xf32>
    %c0_14 = arith.constant 0 : index
    %c0_15 = arith.constant 0 : index
    %14 = vector.load %arg10[%c0_14, %c0_15] : memref<16x32xf32, #tpu.memory_space<vmem>>, vector<16x32xf32>
    tpu.vector_store %arg10[%c0_14, %c0_15], %13 {strides = array<i32>} : memref<16x32xf32, #tpu.memory_space<vmem>>, vector<16x32xf32>,
    %c0_16 = arith.constant 0 : index
    %c0_17 = arith.constant 0 : index
    %15 = vector.load %arg7[%c0_16, %c0_17] : memref<32x32xf32, #tpu.memory_space<vmem>>, vector<32x32xf32>
    %cst_18 = arith.constant dense<0.000000e+00> : vector<16x32xf32>
    %16 = tpu.matmul %0, %15, %cst_18 {dimension_numbers = #tpu.dot_dimension_numbers<[1], [0], [0], [1], [0, 0, 1, 1], [], []>} : vector<16x32xf32>, vector<32x32xf32>, vector<16x32xf32> -> vector<16x32xf32>
    %c0_19 = arith.constant 0 : index
    %c0_20 = arith.constant 0 : index
    %17 = vector.load %arg8[%c0_19, %c0_20] : memref<1x32xf32, #tpu.memory_space<vmem>>, vector<1x32xf32>
    %18 = vector.broadcast %17 : vector<1x32xf32> to vector<16x32xf32>
    %19 = arith.addf %16, %18 : vector<16x32xf32>
    %c0_21 = arith.constant 0 : index
    %c0_22 = arith.constant 0 : index
    %20 = vector.load %arg11[%c0_21, %c0_22] : memref<16x32xf32, #tpu.memory_space<vmem>>, vector<16x32xf32>
    tpu.vector_store %arg11[%c0_21, %c0_22], %19 {strides = array<i32>} : memref<16x32xf32, #tpu.memory_space<vmem>>, vector<16x32xf32>,
    return
  }
  func.func @transform_0(%arg0: i32) -> (i32, i32) {
    %c0_i32 = arith.constant 0 : i32
    %c0_i32_0 = arith.constant 0 : i32
    return %arg0, %c0_i32 : i32, i32
  }
  func.func @transform_1(%arg0: i32) -> (i32, i32) {
    %c0_i32 = arith.constant 0 : i32
    %c0_i32_0 = arith.constant 0 : i32
    return %arg0, %c0_i32 : i32, i32
  }
  func.func @transform_2(%arg0: i32) -> (i32, i32) {
    %c0_i32 = arith.constant 0 : i32
    %c0_i32_0 = arith.constant 0 : i32
    %c0_i32_1 = arith.constant 0 : i32
    return %c0_i32, %c0_i32_0 : i32, i32
  }
  func.func @transform_3(%arg0: i32) -> (i32, i32) {
    %c0_i32 = arith.constant 0 : i32
    %c0_i32_0 = arith.constant 0 : i32
    %c0_i32_1 = arith.constant 0 : i32
    return %c0_i32, %c0_i32_0 : i32, i32
  }
  func.func @transform_4(%arg0: i32) -> (i32, i32) {
    %c0_i32 = arith.constant 0 : i32
    %c0_i32_0 = arith.constant 0 : i32
    %c0_i32_1 = arith.constant 0 : i32
    return %c0_i32, %c0_i32_0 : i32, i32
  }
  func.func @transform_5(%arg0: i32) -> (i32, i32) {
    %c0_i32 = arith.constant 0 : i32
    %c0_i32_0 = arith.constant 0 : i32
    %c0_i32_1 = arith.constant 0 : i32
    return %c0_i32, %c0_i32_0 : i32, i32
  }
  func.func @transform_6(%arg0: i32) -> (i32, i32) {
    %c0_i32 = arith.constant 0 : i32
    %c0_i32_0 = arith.constant 0 : i32
    %c0_i32_1 = arith.constant 0 : i32
    return %c0_i32, %c0_i32_0 : i32, i32
  }
  func.func @transform_7(%arg0: i32) -> (i32, i32) {
    %c0_i32 = arith.constant 0 : i32
    %c0_i32_0 = arith.constant 0 : i32
    %c0_i32_1 = arith.constant 0 : i32
    return %c0_i32, %c0_i32_0 : i32, i32
  }
  func.func @transform_8(%arg0: i32) -> (i32, i32) {
    %c0_i32 = arith.constant 0 : i32
    %c0_i32_0 = arith.constant 0 : i32
    return %arg0, %c0_i32 : i32, i32
  }
  func.func @transform_9(%arg0: i32) -> (i32, i32) {
    %c0_i32 = arith.constant 0 : i32
    %c0_i32_0 = arith.constant 0 : i32
    return %arg0, %c0_i32 : i32, i32
  }
  func.func @transform_10(%arg0: i32) -> (i32, i32) {
    %c0_i32 = arith.constant 0 : i32
    %c0_i32_0 = arith.constant 0 : i32
    return %arg0, %c0_i32 : i32, i32
  }
}

module attributes {stable_mosaic.version = 11 : i64} {
  func.func @_q_proj_kernel(%arg0: i32, %arg1: memref<16x32xf32, #tpu.memory_space<vmem>>, %arg2: memref<16x32xf32, #tpu.memory_space<vmem>>, %arg3: memref<32x32xf32, #tpu.memory_space<vmem>>, %arg4: memref<1x32xf32, #tpu.memory_space<vmem>>, %arg5: memref<16x32xf32, #tpu.memory_space<vmem>>) attributes {dimension_semantics = [#tpu.dimension_semantics<parallel>], iteration_bounds = array<i64: 1>, scalar_prefetch = 0 : i64, scratch_operands = 0 : i64, tpu.core_type = #tpu.core_type<tc>, window_params = [{transform_indices = @transform_0, window_bounds = array<i64: 16, 32>}, {transform_indices = @transform_1, window_bounds = array<i64: 16, 32>}, {pipeline_mode = #tpu.pipeline_mode<synchronous>, transform_indices = @transform_2, window_bounds = array<i64: 32, 32>}, {pipeline_mode = #tpu.pipeline_mode<synchronous>, transform_indices = @transform_3, window_bounds = array<i64: 1, 32>}, {transform_indices = @transform_4, window_bounds = array<i64: 16, 32>}]} {
    %c0 = arith.constant 0 : index
    %c0_0 = arith.constant 0 : index
    %0 = vector.load %arg1[%c0, %c0_0] : memref<16x32xf32, #tpu.memory_space<vmem>>, vector<16x32xf32>
    %c0_1 = arith.constant 0 : index
    %c0_2 = arith.constant 0 : index
    %1 = vector.load %arg2[%c0_1, %c0_2] : memref<16x32xf32, #tpu.memory_space<vmem>>, vector<16x32xf32>
    %2 = arith.addf %0, %1 : vector<16x32xf32>
    %c0_3 = arith.constant 0 : index
    %c0_4 = arith.constant 0 : index
    %3 = vector.load %arg3[%c0_3, %c0_4] : memref<32x32xf32, #tpu.memory_space<vmem>>, vector<32x32xf32>
    %cst = arith.constant dense<0.000000e+00> : vector<16x32xf32>
    %4 = tpu.matmul %2, %3, %cst {dimension_numbers = #tpu.dot_dimension_numbers<[1], [0], [0], [1], [0, 0, 1, 1], [], []>} : vector<16x32xf32>, vector<32x32xf32>, vector<16x32xf32> -> vector<16x32xf32>
    %c0_5 = arith.constant 0 : index
    %c0_6 = arith.constant 0 : index
    %5 = vector.load %arg4[%c0_5, %c0_6] : memref<1x32xf32, #tpu.memory_space<vmem>>, vector<1x32xf32>
    %6 = vector.broadcast %5 : vector<1x32xf32> to vector<16x32xf32>
    %7 = arith.addf %4, %6 : vector<16x32xf32>
    %c0_7 = arith.constant 0 : index
    %c0_8 = arith.constant 0 : index
    %8 = vector.load %arg5[%c0_7, %c0_8] : memref<16x32xf32, #tpu.memory_space<vmem>>, vector<16x32xf32>
    tpu.vector_store %arg5[%c0_7, %c0_8], %7 {strides = array<i32>} : memref<16x32xf32, #tpu.memory_space<vmem>>, vector<16x32xf32>,
    return
  }
  func.func @transform_0(%arg0: i32) -> (i32, i32) {
    %c0_i32 = arith.constant 0 : i32
    %c0_i32_0 = arith.constant 0 : i32
    return %arg0, %c0_i32 : i32, i32
  }
  func.func @transform_1(%arg0: i32) -> (i32, i32) {
    %c0_i32 = arith.constant 0 : i32
    %c0_i32_0 = arith.constant 0 : i32
    return %arg0, %c0_i32 : i32, i32
  }
  func.func @transform_2(%arg0: i32) -> (i32, i32) {
    %c0_i32 = arith.constant 0 : i32
    %c0_i32_0 = arith.constant 0 : i32
    %c0_i32_1 = arith.constant 0 : i32
    return %c0_i32, %c0_i32_0 : i32, i32
  }
  func.func @transform_3(%arg0: i32) -> (i32, i32) {
    %c0_i32 = arith.constant 0 : i32
    %c0_i32_0 = arith.constant 0 : i32
    %c0_i32_1 = arith.constant 0 : i32
    return %c0_i32, %c0_i32_0 : i32, i32
  }
  func.func @transform_4(%arg0: i32) -> (i32, i32) {
    %c0_i32 = arith.constant 0 : i32
    %c0_i32_0 = arith.constant 0 : i32
    return %arg0, %c0_i32 : i32, i32
  }
}

module attributes {stable_mosaic.version = 11 : i64} {
  func.func @_mha_kernel(%arg0: i32, %arg1: memref<1x8x32xf32, #tpu.memory_space<vmem>>, %arg2: memref<1x16x32xf32, #tpu.memory_space<vmem>>, %arg3: memref<1x16x32xf32, #tpu.memory_space<vmem>>, %arg4: memref<1x8x32xf32, #tpu.memory_space<vmem>>) attributes {dimension_semantics = [#tpu.dimension_semantics<parallel>], iteration_bounds = array<i64: 2>, scalar_prefetch = 0 : i64, scratch_operands = 0 : i64, tpu.core_type = #tpu.core_type<tc>, window_params = [{transform_indices = @transform_0, window_bounds = array<i64: 1, 8, 32>}, {transform_indices = @transform_1, window_bounds = array<i64: 1, 16, 32>}, {transform_indices = @transform_2, window_bounds = array<i64: 1, 16, 32>}, {transform_indices = @transform_3, window_bounds = array<i64: 1, 8, 32>}]} {
    %c0 = arith.constant 0 : index
    %c0_0 = arith.constant 0 : index
    %c0_1 = arith.constant 0 : index
    %0 = vector.load %arg1[%c0, %c0_0, %c0_1] : memref<1x8x32xf32, #tpu.memory_space<vmem>>, vector<1x8x32xf32>
    %1 = vector.shape_cast %0 : vector<1x8x32xf32> to vector<8x32xf32>
    %c0_2 = arith.constant 0 : index
    %c0_3 = arith.constant 0 : index
    %c0_4 = arith.constant 0 : index
    %2 = vector.load %arg2[%c0_2, %c0_3, %c0_4] : memref<1x16x32xf32, #tpu.memory_space<vmem>>, vector<1x16x32xf32>
    %3 = vector.shape_cast %2 : vector<1x16x32xf32> to vector<16x32xf32>
    %c0_5 = arith.constant 0 : index
    %c0_6 = arith.constant 0 : index
    %c0_7 = arith.constant 0 : index
    %4 = vector.load %arg3[%c0_5, %c0_6, %c0_7] : memref<1x16x32xf32, #tpu.memory_space<vmem>>, vector<1x16x32xf32>
    %5 = vector.shape_cast %4 : vector<1x16x32xf32> to vector<16x32xf32>
    %6 = vector.extract_strided_slice %1 {offsets = [0, 0], sizes = [8, 8], strides = [1, 1]} : vector<8x32xf32> to vector<8x8xf32>
    %7 = vector.extract_strided_slice %3 {offsets = [0, 0], sizes = [16, 8], strides = [1, 1]} : vector<16x32xf32> to vector<16x8xf32>
    %8 = vector.extract_strided_slice %5 {offsets = [0, 0], sizes = [16, 8], strides = [1, 1]} : vector<16x32xf32> to vector<16x8xf32>
    %cst = arith.constant dense<0.000000e+00> : vector<8x16xf32>
    %9 = tpu.matmul %6, %7, %cst {dimension_numbers = #tpu.dot_dimension_numbers<[1], [1], [0], [0], [0, 0, 1, 0], [], []>} : vector<8x8xf32>, vector<16x8xf32>, vector<8x16xf32> -> vector<8x16xf32>
    %cst_8 = arith.constant 0.353553385 : f32
    %10 = vector.broadcast %cst_8 : f32 to vector<8x16xf32>
    %11 = arith.mulf %9, %10 : vector<8x16xf32>
    %cst_9 = arith.constant dense<0xFF800000> : vector<8xf32>
    %12 = vector.multi_reduction <maximumf>, %11, %cst_9 [1] : vector<8x16xf32> to vector<8xf32>
    %13 = vector.shape_cast %12 : vector<8xf32> to vector<8x1xf32>
    %14 = vector.broadcast %13 : vector<8x1xf32> to vector<8x16xf32>
    %15 = arith.subf %11, %14 : vector<8x16xf32>
    %16 = math.exp %15 : vector<8x16xf32>
    %cst_10 = arith.constant dense<0.000000e+00> : vector<8xf32>
    %17 = vector.multi_reduction <add>, %16, %cst_10 [1] : vector<8x16xf32> to vector<8xf32>
    %18 = vector.shape_cast %17 : vector<8xf32> to vector<8x1xf32>
    %19 = tpu.reciprocal %18 {approx = true} : vector<8x1xf32> -> vector<8x1xf32>
    %20 = vector.broadcast %19 : vector<8x1xf32> to vector<8x16xf32>
    %21 = arith.mulf %16, %20 : vector<8x16xf32>
    %cst_11 = arith.constant dense<0.000000e+00> : vector<8x8xf32>
    %22 = tpu.matmul %21, %8, %cst_11 {dimension_numbers = #tpu.dot_dimension_numbers<[1], [0], [0], [1], [0, 0, 1, 1], [], []>} : vector<8x16xf32>, vector<16x8xf32>, vector<8x8xf32> -> vector<8x8xf32>
    %23 = vector.extract_strided_slice %1 {offsets = [0, 8], sizes = [8, 8], strides = [1, 1]} : vector<8x32xf32> to vector<8x8xf32>
    %24 = vector.extract_strided_slice %3 {offsets = [0, 8], sizes = [16, 8], strides = [1, 1]} : vector<16x32xf32> to vector<16x8xf32>
    %25 = vector.extract_strided_slice %5 {offsets = [0, 8], sizes = [16, 8], strides = [1, 1]} : vector<16x32xf32> to vector<16x8xf32>
    %cst_12 = arith.constant dense<0.000000e+00> : vector<8x16xf32>
    %26 = tpu.matmul %23, %24, %cst_12 {dimension_numbers = #tpu.dot_dimension_numbers<[1], [1], [0], [0], [0, 0, 1, 0], [], []>} : vector<8x8xf32>, vector<16x8xf32>, vector<8x16xf32> -> vector<8x16xf32>
    %cst_13 = arith.constant 0.353553385 : f32
    %27 = vector.broadcast %cst_13 : f32 to vector<8x16xf32>
    %28 = arith.mulf %26, %27 : vector<8x16xf32>
    %cst_14 = arith.constant dense<0xFF800000> : vector<8xf32>
    %29 = vector.multi_reduction <maximumf>, %28, %cst_14 [1] : vector<8x16xf32> to vector<8xf32>
    %30 = vector.shape_cast %29 : vector<8xf32> to vector<8x1xf32>
    %31 = vector.broadcast %30 : vector<8x1xf32> to vector<8x16xf32>
    %32 = arith.subf %28, %31 : vector<8x16xf32>
    %33 = math.exp %32 : vector<8x16xf32>
    %cst_15 = arith.constant dense<0.000000e+00> : vector<8xf32>
    %34 = vector.multi_reduction <add>, %33, %cst_15 [1] : vector<8x16xf32> to vector<8xf32>
    %35 = vector.shape_cast %34 : vector<8xf32> to vector<8x1xf32>
    %36 = tpu.reciprocal %35 {approx = true} : vector<8x1xf32> -> vector<8x1xf32>
    %37 = vector.broadcast %36 : vector<8x1xf32> to vector<8x16xf32>
    %38 = arith.mulf %33, %37 : vector<8x16xf32>
    %cst_16 = arith.constant dense<0.000000e+00> : vector<8x8xf32>
    %39 = tpu.matmul %38, %25, %cst_16 {dimension_numbers = #tpu.dot_dimension_numbers<[1], [0], [0], [1], [0, 0, 1, 1], [], []>} : vector<8x16xf32>, vector<16x8xf32>, vector<8x8xf32> -> vector<8x8xf32>
    %40 = vector.extract_strided_slice %1 {offsets = [0, 16], sizes = [8, 8], strides = [1, 1]} : vector<8x32xf32> to vector<8x8xf32>
    %41 = vector.extract_strided_slice %3 {offsets = [0, 16], sizes = [16, 8], strides = [1, 1]} : vector<16x32xf32> to vector<16x8xf32>
    %42 = vector.extract_strided_slice %5 {offsets = [0, 16], sizes = [16, 8], strides = [1, 1]} : vector<16x32xf32> to vector<16x8xf32>
    %cst_17 = arith.constant dense<0.000000e+00> : vector<8x16xf32>
    %43 = tpu.matmul %40, %41, %cst_17 {dimension_numbers = #tpu.dot_dimension_numbers<[1], [1], [0], [0], [0, 0, 1, 0], [], []>} : vector<8x8xf32>, vector<16x8xf32>, vector<8x16xf32> -> vector<8x16xf32>
    %cst_18 = arith.constant 0.353553385 : f32
    %44 = vector.broadcast %cst_18 : f32 to vector<8x16xf32>
    %45 = arith.mulf %43, %44 : vector<8x16xf32>
    %cst_19 = arith.constant dense<0xFF800000> : vector<8xf32>
    %46 = vector.multi_reduction <maximumf>, %45, %cst_19 [1] : vector<8x16xf32> to vector<8xf32>
    %47 = vector.shape_cast %46 : vector<8xf32> to vector<8x1xf32>
    %48 = vector.broadcast %47 : vector<8x1xf32> to vector<8x16xf32>
    %49 = arith.subf %45, %48 : vector<8x16xf32>
    %50 = math.exp %49 : vector<8x16xf32>
    %cst_20 = arith.constant dense<0.000000e+00> : vector<8xf32>
    %51 = vector.multi_reduction <add>, %50, %cst_20 [1] : vector<8x16xf32> to vector<8xf32>
    %52 = vector.shape_cast %51 : vector<8xf32> to vector<8x1xf32>
    %53 = tpu.reciprocal %52 {approx = true} : vector<8x1xf32> -> vector<8x1xf32>
    %54 = vector.broadcast %53 : vector<8x1xf32> to vector<8x16xf32>
    %55 = arith.mulf %50, %54 : vector<8x16xf32>
    %cst_21 = arith.constant dense<0.000000e+00> : vector<8x8xf32>
    %56 = tpu.matmul %55, %42, %cst_21 {dimension_numbers = #tpu.dot_dimension_numbers<[1], [0], [0], [1], [0, 0, 1, 1], [], []>} : vector<8x16xf32>, vector<16x8xf32>, vector<8x8xf32> -> vector<8x8xf32>
    %57 = vector.extract_strided_slice %1 {offsets = [0, 24], sizes = [8, 8], strides = [1, 1]} : vector<8x32xf32> to vector<8x8xf32>
    %58 = vector.extract_strided_slice %3 {offsets = [0, 24], sizes = [16, 8], strides = [1, 1]} : vector<16x32xf32> to vector<16x8xf32>
    %59 = vector.extract_strided_slice %5 {offsets = [0, 24], sizes = [16, 8], strides = [1, 1]} : vector<16x32xf32> to vector<16x8xf32>
    %cst_22 = arith.constant dense<0.000000e+00> : vector<8x16xf32>
    %60 = tpu.matmul %57, %58, %cst_22 {dimension_numbers = #tpu.dot_dimension_numbers<[1], [1], [0], [0], [0, 0, 1, 0], [], []>} : vector<8x8xf32>, vector<16x8xf32>, vector<8x16xf32> -> vector<8x16xf32>
    %cst_23 = arith.constant 0.353553385 : f32
    %61 = vector.broadcast %cst_23 : f32 to vector<8x16xf32>
    %62 = arith.mulf %60, %61 : vector<8x16xf32>
    %cst_24 = arith.constant dense<0xFF800000> : vector<8xf32>
    %63 = vector.multi_reduction <maximumf>, %62, %cst_24 [1] : vector<8x16xf32> to vector<8xf32>
    %64 = vector.shape_cast %63 : vector<8xf32> to vector<8x1xf32>
    %65 = vector.broadcast %64 : vector<8x1xf32> to vector<8x16xf32>
    %66 = arith.subf %62, %65 : vector<8x16xf32>
    %67 = math.exp %66 : vector<8x16xf32>
    %cst_25 = arith.constant dense<0.000000e+00> : vector<8xf32>
    %68 = vector.multi_reduction <add>, %67, %cst_25 [1] : vector<8x16xf32> to vector<8xf32>
    %69 = vector.shape_cast %68 : vector<8xf32> to vector<8x1xf32>
    %70 = tpu.reciprocal %69 {approx = true} : vector<8x1xf32> -> vector<8x1xf32>
    %71 = vector.broadcast %70 : vector<8x1xf32> to vector<8x16xf32>
    %72 = arith.mulf %67, %71 : vector<8x16xf32>
    %cst_26 = arith.constant dense<0.000000e+00> : vector<8x8xf32>
    %73 = tpu.matmul %72, %59, %cst_26 {dimension_numbers = #tpu.dot_dimension_numbers<[1], [0], [0], [1], [0, 0, 1, 1], [], []>} : vector<8x16xf32>, vector<16x8xf32>, vector<8x8xf32> -> vector<8x8xf32>
    %74 = tpu.concatenate %22, %39, %56, %73 in 1 : vector<8x8xf32>, vector<8x8xf32>, vector<8x8xf32>, vector<8x8xf32> -> vector<8x32xf32>
    %c0_27 = arith.constant 0 : index
    %c0_28 = arith.constant 0 : index
    %c0_29 = arith.constant 0 : index
    %75 = vector.load %arg4[%c0_27, %c0_28, %c0_29] : memref<1x8x32xf32, #tpu.memory_space<vmem>>, vector<1x8x32xf32>
    %76 = vector.shape_cast %75 : vector<1x8x32xf32> to vector<8x32xf32>
    %77 = vector.shape_cast %74 : vector<8x32xf32> to vector<1x8x32xf32>
    tpu.vector_store %arg4[%c0_27, %c0_28, %c0_29], %77 {strides = array<i32>} : memref<1x8x32xf32, #tpu.memory_space<vmem>>, vector<1x8x32xf32>,
    return
  }
  func.func @transform_0(%arg0: i32) -> (i32, i32, i32) {
    %c0_i32 = arith.constant 0 : i32
    %c0_i32_0 = arith.constant 0 : i32
    %c0_i32_1 = arith.constant 0 : i32
    return %arg0, %c0_i32, %c0_i32_0 : i32, i32, i32
  }
  func.func @transform_1(%arg0: i32) -> (i32, i32, i32) {
    %c0_i32 = arith.constant 0 : i32
    %c0_i32_0 = arith.constant 0 : i32
    %c0_i32_1 = arith.constant 0 : i32
    return %arg0, %c0_i32, %c0_i32_0 : i32, i32, i32
  }
  func.func @transform_2(%arg0: i32) -> (i32, i32, i32) {
    %c0_i32 = arith.constant 0 : i32
    %c0_i32_0 = arith.constant 0 : i32
    %c0_i32_1 = arith.constant 0 : i32
    return %arg0, %c0_i32, %c0_i32_0 : i32, i32, i32
  }
  func.func @transform_3(%arg0: i32) -> (i32, i32, i32) {
    %c0_i32 = arith.constant 0 : i32
    %c0_i32_0 = arith.constant 0 : i32
    %c0_i32_1 = arith.constant 0 : i32
    return %arg0, %c0_i32, %c0_i32_0 : i32, i32, i32
  }
}

module attributes {stable_mosaic.version = 11 : i64} {
  func.func @_ffn_kernel(%arg0: i32, %arg1: memref<16x32xf32, #tpu.memory_space<vmem>>, %arg2: memref<32x64xf32, #tpu.memory_space<vmem>>, %arg3: memref<1x64xf32, #tpu.memory_space<vmem>>, %arg4: memref<64x32xf32, #tpu.memory_space<vmem>>, %arg5: memref<1x32xf32, #tpu.memory_space<vmem>>, %arg6: memref<1x32xf32, #tpu.memory_space<vmem>>, %arg7: memref<1x32xf32, #tpu.memory_space<vmem>>, %arg8: memref<16x32xf32, #tpu.memory_space<vmem>>) attributes {dimension_semantics = [#tpu.dimension_semantics<parallel>], iteration_bounds = array<i64: 1>, scalar_prefetch = 0 : i64, scratch_operands = 0 : i64, tpu.core_type = #tpu.core_type<tc>, window_params = [{transform_indices = @transform_0, window_bounds = array<i64: 16, 32>}, {pipeline_mode = #tpu.pipeline_mode<synchronous>, transform_indices = @transform_1, window_bounds = array<i64: 32, 64>}, {pipeline_mode = #tpu.pipeline_mode<synchronous>, transform_indices = @transform_2, window_bounds = array<i64: 1, 64>}, {pipeline_mode = #tpu.pipeline_mode<synchronous>, transform_indices = @transform_3, window_bounds = array<i64: 64, 32>}, {pipeline_mode = #tpu.pipeline_mode<synchronous>, transform_indices = @transform_4, window_bounds = array<i64: 1, 32>}, {pipeline_mode = #tpu.pipeline_mode<synchronous>, transform_indices = @transform_5, window_bounds = array<i64: 1, 32>}, {pipeline_mode = #tpu.pipeline_mode<synchronous>, transform_indices = @transform_6, window_bounds = array<i64: 1, 32>}, {transform_indices = @transform_7, window_bounds = array<i64: 16, 32>}]} {
    %c0 = arith.constant 0 : index
    %c0_0 = arith.constant 0 : index
    %0 = vector.load %arg1[%c0, %c0_0] : memref<16x32xf32, #tpu.memory_space<vmem>>, vector<16x32xf32>
    %c0_1 = arith.constant 0 : index
    %c0_2 = arith.constant 0 : index
    %1 = vector.load %arg2[%c0_1, %c0_2] : memref<32x64xf32, #tpu.memory_space<vmem>>, vector<32x64xf32>
    %cst = arith.constant dense<0.000000e+00> : vector<16x64xf32>
    %2 = tpu.matmul %0, %1, %cst {dimension_numbers = #tpu.dot_dimension_numbers<[1], [0], [0], [1], [0, 0, 1, 1], [], []>} : vector<16x32xf32>, vector<32x64xf32>, vector<16x64xf32> -> vector<16x64xf32>
    %c0_3 = arith.constant 0 : index
    %c0_4 = arith.constant 0 : index
    %3 = vector.load %arg3[%c0_3, %c0_4] : memref<1x64xf32, #tpu.memory_space<vmem>>, vector<1x64xf32>
    %4 = vector.broadcast %3 : vector<1x64xf32> to vector<16x64xf32>
    %5 = arith.addf %2, %4 : vector<16x64xf32>
    %cst_5 = arith.constant 0.000000e+00 : f32
    %6 = vector.broadcast %cst_5 : f32 to vector<16x64xf32>
    %7 = arith.maximumf %5, %6 : vector<16x64xf32>
    %c0_6 = arith.constant 0 : index
    %c0_7 = arith.constant 0 : index
    %8 = vector.load %arg4[%c0_6, %c0_7] : memref<64x32xf32, #tpu.memory_space<vmem>>, vector<64x32xf32>
    %cst_8 = arith.constant dense<0.000000e+00> : vector<16x32xf32>
    %9 = tpu.matmul %7, %8, %cst_8 {dimension_numbers = #tpu.dot_dimension_numbers<[1], [0], [0], [1], [0, 0, 1, 1], [], []>} : vector<16x64xf32>, vector<64x32xf32>, vector<16x32xf32> -> vector<16x32xf32>
    %c0_9 = arith.constant 0 : index
    %c0_10 = arith.constant 0 : index
    %10 = vector.load %arg5[%c0_9, %c0_10] : memref<1x32xf32, #tpu.memory_space<vmem>>, vector<1x32xf32>
    %11 = vector.broadcast %10 : vector<1x32xf32> to vector<16x32xf32>
    %12 = arith.addf %9, %11 : vector<16x32xf32>
    %13 = arith.addf %0, %12 : vector<16x32xf32>
    %cst_11 = arith.constant dense<0.000000e+00> : vector<16xf32>
    %14 = vector.multi_reduction <add>, %13, %cst_11 [1] : vector<16x32xf32> to vector<16xf32>
    %15 = vector.shape_cast %14 : vector<16xf32> to vector<16x1xf32>
    %cst_12 = arith.constant 3.200000e+01 : f32
    %16 = vector.broadcast %cst_12 : f32 to vector<16x1xf32>
    %17 = arith.divf %15, %16 : vector<16x1xf32>
    %18 = vector.broadcast %17 : vector<16x1xf32> to vector<16x32xf32>
    %19 = arith.subf %13, %18 : vector<16x32xf32>
    %20 = arith.mulf %19, %19 : vector<16x32xf32>
    %cst_13 = arith.constant dense<0.000000e+00> : vector<16xf32>
    %21 = vector.multi_reduction <add>, %20, %cst_13 [1] : vector<16x32xf32> to vector<16xf32>
    %22 = vector.shape_cast %21 : vector<16xf32> to vector<16x1xf32>
    %cst_14 = arith.constant 3.200000e+01 : f32
    %23 = vector.broadcast %cst_14 : f32 to vector<16x1xf32>
    %24 = arith.divf %22, %23 : vector<16x1xf32>
    %25 = vector.broadcast %17 : vector<16x1xf32> to vector<16x32xf32>
    %26 = arith.subf %13, %25 : vector<16x32xf32>
    %cst_15 = arith.constant 9.99999974E-6 : f32
    %27 = vector.broadcast %cst_15 : f32 to vector<16x1xf32>
    %28 = arith.addf %24, %27 : vector<16x1xf32>
    %29 = math.rsqrt %28 : vector<16x1xf32>
    %30 = vector.broadcast %29 : vector<16x1xf32> to vector<16x32xf32>
    %31 = arith.mulf %26, %30 : vector<16x32xf32>
    %c0_16 = arith.constant 0 : index
    %c0_17 = arith.constant 0 : index
    %32 = vector.load %arg6[%c0_16, %c0_17] : memref<1x32xf32, #tpu.memory_space<vmem>>, vector<1x32xf32>
    %33 = vector.broadcast %32 : vector<1x32xf32> to vector<16x32xf32>
    %34 = arith.mulf %31, %33 : vector<16x32xf32>
    %c0_18 = arith.constant 0 : index
    %c0_19 = arith.constant 0 : index
    %35 = vector.load %arg7[%c0_18, %c0_19] : memref<1x32xf32, #tpu.memory_space<vmem>>, vector<1x32xf32>
    %36 = vector.broadcast %35 : vector<1x32xf32> to vector<16x32xf32>
    %37 = arith.addf %34, %36 : vector<16x32xf32>
    %c0_20 = arith.constant 0 : index
    %c0_21 = arith.constant 0 : index
    %38 = vector.load %arg8[%c0_20, %c0_21] : memref<16x32xf32, #tpu.memory_space<vmem>>, vector<16x32xf32>
    tpu.vector_store %arg8[%c0_20, %c0_21], %37 {strides = array<i32>} : memref<16x32xf32, #tpu.memory_space<vmem>>, vector<16x32xf32>,
    return
  }
  func.func @transform_0(%arg0: i32) -> (i32, i32) {
    %c0_i32 = arith.constant 0 : i32
    %c0_i32_0 = arith.constant 0 : i32
    return %arg0, %c0_i32 : i32, i32
  }
  func.func @transform_1(%arg0: i32) -> (i32, i32) {
    %c0_i32 = arith.constant 0 : i32
    %c0_i32_0 = arith.constant 0 : i32
    %c0_i32_1 = arith.constant 0 : i32
    return %c0_i32, %c0_i32_0 : i32, i32
  }
  func.func @transform_2(%arg0: i32) -> (i32, i32) {
    %c0_i32 = arith.constant 0 : i32
    %c0_i32_0 = arith.constant 0 : i32
    %c0_i32_1 = arith.constant 0 : i32
    return %c0_i32, %c0_i32_0 : i32, i32
  }
  func.func @transform_3(%arg0: i32) -> (i32, i32) {
    %c0_i32 = arith.constant 0 : i32
    %c0_i32_0 = arith.constant 0 : i32
    %c0_i32_1 = arith.constant 0 : i32
    return %c0_i32, %c0_i32_0 : i32, i32
  }
  func.func @transform_4(%arg0: i32) -> (i32, i32) {
    %c0_i32 = arith.constant 0 : i32
    %c0_i32_0 = arith.constant 0 : i32
    %c0_i32_1 = arith.constant 0 : i32
    return %c0_i32, %c0_i32_0 : i32, i32
  }
  func.func @transform_5(%arg0: i32) -> (i32, i32) {
    %c0_i32 = arith.constant 0 : i32
    %c0_i32_0 = arith.constant 0 : i32
    %c0_i32_1 = arith.constant 0 : i32
    return %c0_i32, %c0_i32_0 : i32, i32
  }
  func.func @transform_6(%arg0: i32) -> (i32, i32) {
    %c0_i32 = arith.constant 0 : i32
    %c0_i32_0 = arith.constant 0 : i32
    %c0_i32_1 = arith.constant 0 : i32
    return %c0_i32, %c0_i32_0 : i32, i32
  }
  func.func @transform_7(%arg0: i32) -> (i32, i32) {
    %c0_i32 = arith.constant 0 : i32
    %c0_i32_0 = arith.constant 0 : i32
    return %arg0, %c0_i32 : i32, i32
  }
}

</mosaic_0001>

<bundles_post_ra>
// kernel: transformer_decoder_layer.12
= control target key start
LH: loop header
LB: loop body
LE: loop exit
PB: predicated region body
PF: predicated region fallthrough
CT: control target
= control target key end

     0   :  { %vm48_vm0 = vcmask 261120   ;;  %s458_s2 = inlined_call_operand.vmem [shape: f32[32,32], index: 2, kind: input, shape index: {}]   ;;  %s459_s4 = inlined_call_operand.vmem [shape: f32[32,32], index: 4, kind: input, shape index: {}]   ;;  %s460_s0 = inlined_call_operand.vmem [shape: f32[32,32], index: 0, kind: input, shape index: {}]   ;;  %s461_s1 = inlined_call_operand.vmem [shape: f32[32,32], index: 1, kind: input, shape index: {}]   ;;  %s462_s3 = inlined_call_operand.vmem [shape: f32[1,32], index: 3, kind: input, shape index: {}]   ;;  %s463_s5 = inlined_call_operand.vmem [shape: f32[1,32], index: 5, kind: input, shape index: {}]   ;;  %s464_s6 = inlined_call_operand.vmem [shape: f32[32,32], index: 6, kind: output, shape index: {0}]   ;;  %s465_s7 = inlined_call_operand.vmem [shape: f32[32,32], index: 7, kind: output, shape index: {1}]  }
   0x1   :  { %v40_v0 = vld [vmem:[%s458_s2 + $0x18] sm:$0xff]  ;;  %v39_v2 = vld [vmem:[%s458_s2 + $0x10] sm:$0xff]  ;;  %v38_v4 = vld [vmem:[%s458_s2 + $0x8] sm:$0xff] }
   0x2   :  { %v153_v1 = vld [vmem:[%s459_s4 + $0x18] sm:$0xff]  ;;  %296 = vmatprep.subr.mxu0 %v40_v0  ;;  %v152_v3 = vld [vmem:[%s459_s4 + $0x10] sm:$0xff]  ;;  %v151_v5 = vld [vmem:[%s459_s4 + $0x8] sm:$0xff] }
   0x3   :  { %310 = vmatprep.subr.mxu1 %v153_v1  ;;  %297 = vmatpush3.msra.mxu0 %v40_v0  ;;  %v37_v6 = vld [vmem:[%s458_s2] sm:$0xff]  ;;  %v26_v9 = vld [vmem:[%s460_s0 + $0x8] sm:$0xff]  ;;  %v27_v13 = vld [vmem:[%s460_s0 + $0x10] sm:$0xff] }
   0x4   :  { %311 = vmatpush3.msra.mxu1 %v153_v1  ;;  %v25_v7 = vld [vmem:[%s460_s0] sm:$0xff]  ;;  %298 = vmatprep.subr.mxu0 %v39_v2  ;;  %v30_v10 = vld [vmem:[%s461_s1 + $0x8] sm:$0xff]  ;;  %v31_v14 = vld [vmem:[%s461_s1 + $0x10] sm:$0xff] }
   0x5   :  { %312 = vmatprep.subr.mxu1 %v152_v3  ;;  %v29_v8 = vld [vmem:[%s461_s1] sm:$0xff]  ;;  %299 = vmatpush3.msra.mxu0 %v39_v2  ;;  %v34_v15 = vadd.f32 %v30_v10, %v26_v9  ;;  %v35_v16 = vadd.f32 %v31_v14, %v27_v13  ;;  %v28_v17 = vld [vmem:[%s460_s0 + $0x18] sm:$0xff] }
   0x6   :  { %313 = vmatpush3.msra.mxu1 %v152_v3  ;;  %v150_v11 = vld [vmem:[%s459_s4] sm:$0xff]  ;;  %v33_v12 = vadd.f32 %v29_v8, %v25_v7  ;;  %300 = vmatprep.subr.mxu0 %v38_v4  ;;  %v32_v18 = vld [vmem:[%s461_s1 + $0x18] sm:$0xff] }
   0x7   :  { %314 = vmatprep.subr.mxu1 %v151_v5  ;;  %301 = vmatpush3.msra.mxu0 %v38_v4  ;;  %v36_v19 = vadd.f32 %v32_v18, %v28_v17  ;;  %v270_v20 = vld [vmem:[%s462_s3] ss:$0 sm:$0xff] }
   0x8   :  { %315 = vmatpush3.msra.mxu1 %v151_v5  ;;  %302 = vmatprep.subr.mxu0 %v37_v6  ;;  %v275_v21 = vld [vmem:[%s463_s5] ss:$0 sm:$0xff] }
   0x9   :  { %316 = vmatprep.subr.mxu1 %v150_v11  ;;  %303 = vmatpush3.msra.mxu0 %v37_v6 }
   0xa   :  { %304 = vmatprep.mubr.msk.f32.mxu0 %vm48_vm0, %v33_v12  ;;  %317 = vmatpush3.msra.mxu1 %v150_v11 }
   0xb   :  { %318 = vmatprep.mubr.msk.f32.mxu1 %vm48_vm0, %v25_v7  ;;  %305 = vmatmul.mubr.msk.f32.vlgmr.msra.gmra.mxu0 %vm48_vm0, %v34_v15 }
   0xc   :  { %319 = vmatmul.mubr.msk.f32.vlgmr.msra.gmra.mxu1 %vm48_vm0, %v26_v9  ;;  %307 = vmatprep.mubr.msk.f32.mxu0 %vm48_vm0, %v35_v16 }
   0xd   :  { %321 = vmatprep.mubr.msk.f32.mxu1 %vm48_vm0, %v27_v13 }
   0xf   :  { %308 = vmatmul.mubr.msk.f32.gmra.mxu0 %vm48_vm0, %v36_v19 }
  0x10   :  { %322 = vmatmul.mubr.msk.f32.gmra.mxu1 %vm48_vm0, %v28_v17 }
  0xcb   :  { %v306_v22 = vpop.f32.mrf.mxu0 }
  0xcc   :  { %v320_v23 = vpop.f32.mrf.mxu1  ;;  %v133_v24 = vadd.f32 %v306_v22, %v270_v20 }
  0xcd   :  { %v245_v25 = vadd.f32 %v320_v23, %v275_v21  ;;  %v127_v26 = vpop.f32.mrf.mxu0 }
  0xce   :  { %v239_v27 = vpop.f32.mrf.mxu1  ;;  %147 = vst.msk [vmem:[%s464_s6 + $0x8] sm:$0xff] %vm48_vm0, %v133_v24  ;;  %v128_v28 = vadd.f32 %v270_v20, %v127_v26 }
  0xcf   :  { %259 = vst.msk [vmem:[%s465_s7 + $0x8] sm:$0xff] %vm48_vm0, %v245_v25  ;;  %v240_v29 = vadd.f32 %v275_v21, %v239_v27  ;;  %v309_v30 = vpop.f32.mrf.mxu0 }
  0xd0   :  { %v323_v31 = vpop.f32.mrf.mxu1  ;;  %146 = vst.msk [vmem:[%s464_s6] sm:$0xff] %vm48_vm0, %v128_v28  ;;  %v143_v32 = vadd.f32 %v309_v30, %v270_v20 }
  0xd1   :  { %258 = vst.msk [vmem:[%s465_s7] sm:$0xff] %vm48_vm0, %v240_v29  ;;  %v255_v33 = vadd.f32 %v323_v31, %v275_v21  ;;  %v137_v34 = vpop.f32.mrf.mxu0 }
  0xd2   :  { %v249_v35 = vpop.f32.mrf.mxu1  ;;  %149 = vst.msk [vmem:[%s464_s6 + $0x18] sm:$0xff] %vm48_vm0, %v143_v32  ;;  %v138_v36 = vadd.f32 %v270_v20, %v137_v34 }
  0xd3   :  { %261 = vst.msk [vmem:[%s465_s7 + $0x18] sm:$0xff] %vm48_vm0, %v255_v33  ;;  %v250_v37 = vadd.f32 %v275_v21, %v249_v35 }
  0xd4   :  { %148 = vst.msk [vmem:[%s464_s6 + $0x10] sm:$0xff] %vm48_vm0, %v138_v36 }
  0xd5   :  { %260 = vst.msk [vmem:[%s465_s7 + $0x10] sm:$0xff] %vm48_vm0, %v250_v37 }

// kernel: transformer_decoder_layer.10
= control target key start
LH: loop header
LB: loop body
LE: loop exit
PB: predicated region body
PF: predicated region fallthrough
CT: control target
= control target key end

     0   :  { %vm36_vm0 = vcmask 261120   ;;  %s281_s2 = inlined_call_operand.vmem [shape: f32[32,32], index: 2, kind: input, shape index: {}]   ;;  %s282_s0 = inlined_call_operand.vmem [shape: f32[16,32], index: 0, kind: input, shape index: {}]   ;;  %s283_s3 = inlined_call_operand.vmem [shape: f32[1,32], index: 3, kind: input, shape index: {}]   ;;  %s284_s1 = inlined_call_operand.vmem [shape: f32[16,32], index: 1, kind: input, shape index: {}]   ;;  %s285_s4 = inlined_call_operand.vmem [shape: f32[1,32], index: 4, kind: input, shape index: {}]   ;;  %s286_s5 = inlined_call_operand.vmem [shape: f32[1,32], index: 5, kind: input, shape index: {}]   ;;  %s287_s6 = inlined_call_operand.vmem [shape: f32[16,32], index: 6, kind: output, shape index: {}]  }
   0x1   :  { %v28_v0 = vld [vmem:[%s281_s2 + $0x18] sm:$0xff]  ;;  %v27_v1 = vld [vmem:[%s281_s2 + $0x10] sm:$0xff]  ;;  %v23_v2 = vld [vmem:[%s282_s0] sm:$0xff] }
   0x2   :  { %184 = vmatprep.subr.mxu0 %v28_v0  ;;  %v26_v3 = vld [vmem:[%s281_s2 + $0x8] sm:$0xff]  ;;  %192 = vmatprep.mubr.msk.f32.mxu0 %vm36_vm0, %v23_v2  ;;  %v25_v4 = vld [vmem:[%s281_s2] sm:$0xff] }
   0x3   :  { %185 = vmatpush3.msra.mxu0 %v28_v0  ;;  %v24_v5 = vld [vmem:[%s282_s0 + $0x8] sm:$0xff]  ;;  %v173_v7 = vld [vmem:[%s283_s3] ss:$0 sm:$0xff] }
   0x4   :  { %186 = vmatprep.subr.mxu0 %v27_v1  ;;  %v118_v9 = vld [vmem:[%s284_s1] sm:$0xff]  ;;  %v119_v12 = vld [vmem:[%s284_s1 + $0x8] sm:$0xff] }
   0x5   :  { %187 = vmatpush3.msra.mxu0 %v27_v1  ;;  %v176_v34 = vld [vmem:[%s285_s4] ss:$0 sm:$0xff] }
   0x6   :  { %188 = vmatprep.subr.mxu0 %v26_v3  ;;  %v177_v36 = vld [vmem:[%s286_s5] ss:$0 sm:$0xff] }
   0x7   :  { %189 = vmatpush3.msra.mxu0 %v26_v3 }
   0x8   :  { %190 = vmatprep.subr.mxu0 %v25_v4 }
   0x9   :  { %191 = vmatpush3.msra.mxu0 %v25_v4 }
   0xa   :  { %193 = vmatmul.mubr.msk.f32.vlgmr.msra.gmra.mxu0 %vm36_vm0, %v24_v5 }
  0xca   :  { %v194_v6 = vpop.f32.mrf.mxu0 }
  0xcb   :  { %v115_v10 = vadd.f32 %v194_v6, %v173_v7 }
  0xcc   :  { %v109_v8 = vpop.f32.mrf.mxu0 }
  0xcd   :  { %v110_v11 = vadd.f32 %v173_v7, %v109_v8  ;;  %v121_v15 = vadd.f32 %v119_v12, %v115_v10 }
  0xcf   :  { %v120_v13 = vadd.f32 %v118_v9, %v110_v11  ;;  %v125_v16 = vsel %vm36_vm0, %v121_v15, 0.0 }
  0xd1   :  { %v122_v14 = vsel %vm36_vm0, %v120_v13, 0.0 }
  0xd2   :  { %123 = vadd.xlane.f32.xlu0 %v122_v14 }
  0xd6   :  { %126 = vadd.xlane.f32.xlu0 %v125_v16 }
 0x15b   :  { %v124_v17 = vpop.xlane.xlu0 %123 }
 0x15c   :  { %v129_v18 = vmul.f32 0.03125, %v124_v17 }
 0x15e   :  { %v131_v19 = vsub.f32 %v120_v13, %v129_v18 }
 0x15f   :  { %v127_v20 = vpop.xlane.xlu0 %126 }
 0x160   :  { %v130_v21 = vmul.f32 0.03125, %v127_v20  ;;  %v133_v22 = vmul.f32 %v131_v19, %v131_v19 }
 0x162   :  { %v132_v23 = vsub.f32 %v121_v15, %v130_v21  ;;  %v135_v24 = vsel %vm36_vm0, %v133_v22, 0.0 }
 0x163   :  { %136 = vadd.xlane.f32.xlu1 %v135_v24 }
 0x164   :  { %v134_v25 = vmul.f32 %v132_v23, %v132_v23 }
 0x166   :  { %v138_v26 = vsel %vm36_vm0, %v134_v25, 0.0 }
 0x167   :  { %139 = vadd.xlane.f32.xlu1 %v138_v26 }
 0x1ec   :  { %v137_v27 = vpop.xlane.xlu1 %136 }
 0x1ed   :  { %v141_v28 = vmul.f32 0.03125, %v137_v27 }
 0x1ef   :  { %v143_v29 = vadd.f32 1e-05, %v141_v28 }
 0x1f0   :  { %v140_v30 = vpop.xlane.xlu1 %139 }
 0x1f1   :  { %195 = vrsqrt.f32 %v143_v29  ;;  %v142_v31 = vmul.f32 0.03125, %v140_v30 }
 0x1f3   :  { %v144_v32 = vadd.f32 1e-05, %v142_v31 }
 0x1f5   :  { %197 = vrsqrt.f32 %v144_v32 }
 0x1fe   :  { %v196_v33 = vpop.eup %195 }
 0x1ff   :  { %v147_v35 = vmul.f32 %v196_v33, %v131_v19 }
 0x201   :  { %v156_v37 = vmul.f32 %v176_v34, %v147_v35 }
 0x202   :  { %v198_v38 = vpop.eup %197 }
 0x203   :  { %v165_v39 = vadd.f32 %v177_v36, %v156_v37  ;;  %v148_v40 = vmul.f32 %v198_v38, %v132_v23 }
 0x205   :  { %167 = vst.msk [vmem:[%s287_s6] sm:$0xff] %vm36_vm0, %v165_v39  ;;  %v157_v41 = vmul.f32 %v176_v34, %v148_v40 }
 0x207   :  { %v166_v42 = vadd.f32 %v177_v36, %v157_v41 }
 0x209   :  { %168 = vst.msk [vmem:[%s287_s6 + $0x8] sm:$0xff] %vm36_vm0, %v166_v42 }

// kernel: transformer_decoder_layer.8
= control target key start
LH: loop header
LB: loop body
LE: loop exit
PB: predicated region body
PF: predicated region fallthrough
CT: control target
= control target key end

     0   :  { %vm49_vm0 = vcmask 261120   ;;  %s529_s2 = inlined_call_operand.vmem [shape: f32[32,32], index: 2, kind: input, shape index: {}]   ;;  %s530_s4 = inlined_call_operand.vmem [shape: f32[32,32], index: 4, kind: input, shape index: {}]   ;;  %s531_s0 = inlined_call_operand.vmem [shape: f32[16,32], index: 0, kind: input, shape index: {}]   ;;  %s532_s1 = inlined_call_operand.vmem [shape: f32[16,32], index: 1, kind: input, shape index: {}]   ;;  %s533_s6 = inlined_call_operand.vmem [shape: f32[32,32], index: 6, kind: input, shape index: {}]   ;;  %s534_s3 = inlined_call_operand.vmem [shape: f32[1,32], index: 3, kind: input, shape index: {}]   ;;  %s535_s5 = inlined_call_operand.vmem [shape: f32[1,32], index: 5, kind: input, shape index: {}]   ;;  %s536_s8 = inlined_call_operand.vmem [shape: f32[16,32], index: 8, kind: output, shape index: {0}]   ;;  %s537_s7 = inlined_call_operand.vmem [shape: f32[1,32], index: 7, kind: input, shape index: {}]   ;;  %s538_s9 = inlined_call_operand.vmem [shape: f32[16,32], index: 9, kind: output, shape index: {1}]   ;;  %s539_s10 = inlined_call_operand.vmem [shape: f32[16,32], index: 10, kind: output, shape index: {2}]  }
   0x1   :  { %v41_v0 = vld [vmem:[%s529_s2 + $0x18] sm:$0xff]  ;;  %v40_v1 = vld [vmem:[%s529_s2 + $0x10] sm:$0xff]  ;;  %v39_v2 = vld [vmem:[%s529_s2 + $0x8] sm:$0xff] }
   0x2   :  { %354 = vmatprep.subr.mxu0 %v41_v0  ;;  %v136_v3 = vld [vmem:[%s530_s4 + $0x18] sm:$0xff]  ;;  %v32_v4 = vld [vmem:[%s531_s0] sm:$0xff]  ;;  %v33_v5 = vld [vmem:[%s531_s0 + $0x8] sm:$0xff] }
   0x3   :  { %355 = vmatpush3.msra.mxu0 %v41_v0  ;;  %365 = vmatprep.subr.mxu1 %v136_v3  ;;  %v34_v6 = vld [vmem:[%s532_s1] sm:$0xff]  ;;  %v35_v7 = vld [vmem:[%s532_s1 + $0x8] sm:$0xff]  ;;  %v135_v9 = vld [vmem:[%s530_s4 + $0x10] sm:$0xff] }
   0x4   :  { %356 = vmatprep.subr.mxu0 %v40_v1  ;;  %v36_v8 = vadd.f32 %v34_v6, %v32_v4  ;;  %366 = vmatpush3.msra.mxu1 %v136_v3  ;;  %v38_v10 = vld [vmem:[%s529_s2] sm:$0xff]  ;;  %v134_v11 = vld [vmem:[%s530_s4 + $0x8] sm:$0xff]  ;;  %v37_v12 = vadd.f32 %v35_v7, %v33_v5  ;;  %v224_v13 = vld [vmem:[%s533_s6 + $0x18] sm:$0xff] }
   0x5   :  { %357 = vmatpush3.msra.mxu0 %v40_v1  ;;  %367 = vmatprep.subr.mxu1 %v135_v9  ;;  %v133_v14 = vld [vmem:[%s530_s4] sm:$0xff]  ;;  %v223_v15 = vld [vmem:[%s533_s6 + $0x10] sm:$0xff]  ;;  %v222_v16 = vld [vmem:[%s533_s6 + $0x8] sm:$0xff] }
   0x6   :  { %358 = vmatprep.subr.mxu0 %v39_v2  ;;  %362 = vmatprep.mubr.msk.f32.mxu0 %vm49_vm0, %v36_v8  ;;  %v221_v17 = vld [vmem:[%s533_s6] sm:$0xff] }
   0x7   :  { %359 = vmatpush3.msra.mxu0 %v39_v2  ;;  %368 = vmatpush3.msra.mxu1 %v135_v9  ;;  %v327_v18 = vld [vmem:[%s534_s3] ss:$0 sm:$0xff] }
   0x8   :  { %360 = vmatprep.subr.mxu0 %v38_v10  ;;  %369 = vmatprep.subr.mxu1 %v134_v11  ;;  %v330_v22 = vld [vmem:[%s535_s5] ss:$0 sm:$0xff] }
   0x9   :  { %361 = vmatpush3.msra.mxu0 %v38_v10  ;;  %370 = vmatpush3.msra.mxu1 %v134_v11  ;;  %v333_v27 = vld [vmem:[%s537_s7] ss:$0 sm:$0xff] }
   0xa   :  { %363 = vmatmul.mubr.msk.f32.vlgmr.msra.gmra.mxu0 %vm49_vm0, %v37_v12  ;;  %376 = vmatprep.subr.mxu0 %v224_v13 }
   0xb   :  { %377 = vmatpush3.msra.mxu0 %v224_v13  ;;  %371 = vmatprep.subr.mxu1 %v133_v14 }
   0xc   :  { %378 = vmatprep.subr.mxu0 %v223_v15  ;;  %372 = vmatpush3.msra.mxu1 %v133_v14 }
   0xd   :  { %379 = vmatpush3.msra.mxu0 %v223_v15  ;;  %373 = vmatprep.mubr.msk.f32.mxu1 %vm49_vm0, %v36_v8 }
   0xe   :  { %380 = vmatprep.subr.mxu0 %v222_v16  ;;  %374 = vmatmul.mubr.msk.f32.vlgmr.msra.gmra.mxu1 %vm49_vm0, %v37_v12 }
   0xf   :  { %381 = vmatpush3.msra.mxu0 %v222_v16  ;;  %384 = vmatprep.mubr.msk.f32.mxu0 %vm49_vm0, %v32_v4 }
  0x10   :  { %382 = vmatprep.subr.mxu0 %v221_v17 }
  0x11   :  { %383 = vmatpush3.msra.mxu0 %v221_v17 }
  0x12   :  { %385 = vmatmul.mubr.msk.f32.vlgmr.msra.gmra.mxu0 %vm49_vm0, %v33_v5 }
  0xca   :  { %v364_v19 = vpop.f32.mrf.mxu0 }
  0xcb   :  { %v128_v20 = vadd.f32 %v364_v19, %v327_v18 }
  0xcc   :  { %v122_v21 = vpop.f32.mrf.mxu0 }
  0xcd   :  { %132 = vst.msk [vmem:[%s536_s8 + $0x8] sm:$0xff] %vm49_vm0, %v128_v20  ;;  %v123_v23 = vadd.f32 %v327_v18, %v122_v21 }
  0xce   :  { %v375_v24 = vpop.f32.mrf.mxu1 }
  0xcf   :  { %131 = vst.msk [vmem:[%s536_s8] sm:$0xff] %vm49_vm0, %v123_v23  ;;  %v216_v25 = vadd.f32 %v375_v24, %v330_v22 }
  0xd0   :  { %v210_v26 = vpop.f32.mrf.mxu1 }
  0xd1   :  { %220 = vst.msk [vmem:[%s538_s9 + $0x8] sm:$0xff] %vm49_vm0, %v216_v25  ;;  %v211_v28 = vadd.f32 %v330_v22, %v210_v26 }
  0xd2   :  { %v386_v29 = vpop.f32.mrf.mxu0 }
  0xd3   :  { %219 = vst.msk [vmem:[%s538_s9] sm:$0xff] %vm49_vm0, %v211_v28  ;;  %v310_v30 = vadd.f32 %v386_v29, %v333_v27 }
  0xd4   :  { %v304_v31 = vpop.f32.mrf.mxu0 }
  0xd5   :  { %314 = vst.msk [vmem:[%s539_s10 + $0x8] sm:$0xff] %vm49_vm0, %v310_v30  ;;  %v305_v32 = vadd.f32 %v333_v27, %v304_v31 }
  0xd7   :  { %313 = vst.msk [vmem:[%s539_s10] sm:$0xff] %vm49_vm0, %v305_v32 }

// kernel: transformer_decoder_layer.9
= control target key start
LH: loop header
LB: loop body
LE: loop exit
PB: predicated region body
PF: predicated region fallthrough
CT: control target
= control target key end

     0   :  { %s1107_s12 = smov 0   ;;  %s1199_s0 = inlined_call_operand.vmem [shape: f32[2,8,32], index: 0, kind: input, shape index: {}]   ;;  %s1200_s1 = inlined_call_operand.vmem [shape: f32[2,8,32], index: 1, kind: input, shape index: {}]   ;;  %s1201_s2 = inlined_call_operand.vmem [shape: f32[2,8,32], index: 2, kind: input, shape index: {}]   ;;  %s1202_s3 = inlined_call_operand.vmem [shape: f32[2,8,32], index: 3, kind: output, shape index: {}]  }
   0x1 LB: > { %s960_s13 = sadd.s32 4294967295, %s1077_s12   ;;  %p964_p0 = scmp.ge.s32.totalorder %s1077_s12, 1  ;;  %s1077_s12 = sphi %s1107_s12, %s13_s12  }
   0x2   : > { %p154_p1 = scmp.lt.s32.totalorder %s1077_s12, 3 }
   0x4   : > { %p155_p2 = pnand %p964_p0, %p154_p1 }
   0x5   : > { %p184_p3 = scmp.lt.s32.totalorder (!%p155_p2), %s960_s13, 1  ;;  %s1081_s21 = smov (!%p155_p2), 120  }
   0x6   : > { %158 = sbr.rel (%p155_p2) target bundleno = 1399 (0x577), region = 32  ;;  %s1082_s22 = smov (!%p155_p2), 112  }
   0x7   : > { %s1083_s23 = smov (!%p155_p2), 104   ;;  %s1084_s27 = smov (!%p155_p2), 8  }
   0x8   : > { %s1085_s28 = smov (!%p155_p2), 16   ;;  %s1086_s29 = smov (!%p155_p2), 24  }
   0xb   : > { %v1079_v0 = vmov 0.0   ;;  %vm1080_vm0 = vmmov 0   ;;  %s1204_s13 = smov (!%p184_p3, %s960_s13), 1  ;;  %vm203_vm1 = vcmask 64512   ;;  %vm877_vm2 = vcmask 130048  }
   0xc   : > { %999 = vmatprep.subr.mxu0 %v1079_v0  ;;  %1001 = vmatprep.mubr.msk.f32.mxu0 %vm1080_vm0, %v1079_v0  ;;  %s1121_s14 = sshll.u32 %s1204_s13, 3  ;;  %vm879_vm3 = vcmask 195584   ;;  %vm881_vm4 = vcmask 261120  }
   0xd   : > { %1004 = vmatprep.subr.mxu1 %v1079_v0  ;;  %1006 = vmatprep.mubr.msk.f32.mxu1 %vm1080_vm0, %v1079_v0  ;;  %s191_s17 = scalar_lea.vmem %s1200_s1, %s1121_s14  ;;  %s187_s20 = scalar_lea.vmem %s1199_s0, %s1121_s14 }
   0xe   : > { %v201_v1 = vld [vmem:[%s191_s17] sm:$0xff]  ;;  %s195_s26 = scalar_lea.vmem %s1201_s2, %s1121_s14  ;;  %s199_s5 = scalar_lea.vmem %s1202_s3, %s1121_s14 }
   0xf   : > { %1000 = vmatpush3.xpose.msk.msra.mxu0 %vm203_vm1, %v201_v1  ;;  %v200_v2 = vld [vmem:[%s187_s20] sm:$0xff]  ;;  %367 = vrot.lane.b32.xlu1 %v201_v1, %s1081_s21 }
  0x10   : > { %1014 = vmatprep.subr.mxu0 %v1079_v0  ;;  %v1147_v12 = vld [vmem:[%s195_s26] sm:$0xff] }
  0x11   : > { %1005 = vmatpush3.msra.mxu1 %v1147_v12 }
  0x12   : > { %1002 = vmatmul.mubr.msk.f32.vlgmr.msra.gmra.mxu0 %vm203_vm1, %v200_v2  ;;  %1009 = vmatprep.subr.mxu1 %v1079_v0 }
  0x13   : > { %1016 = vmatprep.mubr.msk.f32.mxu0 %vm1080_vm0, %v1079_v0  ;;  %365 = vrot.lane.b32.xlu1 %v200_v2, %s1081_s21 }
  0x17   : > { %532 = vrot.lane.b32.xlu1 %v200_v2, %s1082_s22 }
  0x1b   : > { %700 = vrot.lane.b32.xlu1 %v201_v1, %s1083_s23 }
  0x1f   : > { %698 = vrot.lane.b32.xlu1 %v200_v2, %s1083_s23 }
  0x81   : > { %v368_v14 = vpop.permute.xlu1 %367 }
  0x85   : > { %v366_v15 = vpop.permute.xlu1 %365 }
  0x89   : > { %v533_v17 = vpop.permute.xlu1 %532 }
  0x8d   : > { %v701_v20 = vpop.permute.xlu1 %700 }
  0x91   : > { %v699_v21 = vpop.permute.xlu1 %698 }
  0xd2   : > { %v276_v3 = vpop.f32.mrf.mxu0 }
  0xd3   : > { %v280_v4 = vmul.f32 0.35355338, %v276_v3 }
  0xd4   : > { %v1003_v5 = vpop.f32.mrf.mxu0 }
  0xd5   : > { %v281_v6 = vsel %vm203_vm1, %v280_v4, -inf }
  0xd6   : > { %282 = vmax.xlane.f32.xlu0 %v281_v6 }
 0x15f   : > { %v283_v7 = vpop.xlane.xlu0 %282 }
 0x160   : > { %v284_v8 = vsub.f32 %v280_v4, %v283_v7 }
 0x162   : > { %v285_v9 = vmul.f32 1.442695, %v284_v8 }
 0x164   : > { %1055 = vpow2.f32 %v285_v9 }
 0x171   : > { %v1056_v10 = vpop.eup %1055 }
 0x172   : > { %v287_v11 = vsel %vm203_vm1, %v1056_v10, 0.0 }
 0x173   : > { %288 = vadd.xlane.f32.xlu0 %v287_v11 }
 0x189   : > { %534 = vrot.lane.b32.xlu0 %v201_v1, %s1082_s22 }
 0x1fc   : > { %v289_v13 = vpop.xlane.xlu0 %288 }
 0x1fd   : > { %1057 = vrcp.f32 %v289_v13 }
 0x200   : > { %v535_v19 = vpop.permute.xlu0 %534 }
 0x20a   : > { %v1058_v16 = vpop.eup %1057 }
 0x20b   : > { %v291_v18 = vmul.f32 %v1058_v16, %v1056_v10 }
 0x20d   : > { %1007 = vmatmul.mubr.msk.f32.vlgmr.msra.gmra.mxu1 %vm203_vm1, %v291_v18 }
 0x20e   : > { %1010 = vmatpush3.xpose.msk.msra.mxu1 %vm203_vm1, %v368_v14  ;;  %1011 = vmatprep.mubr.msk.f32.mxu1 %vm1080_vm0, %v1079_v0 }
 0x20f   : > { %1019 = vmatprep.subr.mxu1 %v1079_v0 }
 0x211   : > { %1012 = vmatmul.mubr.msk.f32.vlgmr.msra.gmra.mxu1 %vm203_vm1, %v366_v15 }
 0x212   : > { %1020 = vmatpush3.xpose.msk.msra.mxu1 %vm203_vm1, %v535_v19  ;;  %1021 = vmatprep.mubr.msk.f32.mxu1 %vm1080_vm0, %v1079_v0 }
 0x213   : > { %1029 = vmatprep.subr.mxu1 %v1079_v0 }
 0x215   : > { %1022 = vmatmul.mubr.msk.f32.vlgmr.msra.gmra.mxu1 %vm203_vm1, %v533_v17 }
 0x216   : > { %1030 = vmatpush3.xpose.msk.msra.mxu1 %vm203_vm1, %v701_v20  ;;  %1031 = vmatprep.mubr.msk.f32.mxu1 %vm1080_vm0, %v1079_v0 }
 0x219   : > { %1032 = vmatmul.mubr.msk.f32.vlgmr.msra.gmra.mxu1 %vm203_vm1, %v699_v21 }
 0x2cd   : > { %v1167_v22 = vpop.f32.mrf.mxu1 }
 0x2cf   : > { %v1008_v23 = vpop.f32.mrf.mxu1 }
 0x2d1   : > { %v439_v24 = vpop.f32.mrf.mxu1 }
 0x2d2   : > { %v443_v25 = vmul.f32 0.35355338, %v439_v24 }
 0x2d3   : > { %v1013_v26 = vpop.f32.mrf.mxu1 }
 0x2d4   : > { %v444_v27 = vsel %vm203_vm1, %v443_v25, -inf }
 0x2d5   : > { %445 = vmax.xlane.f32.xlu1 %v444_v27  ;;  %v606_v28 = vpop.f32.mrf.mxu1 }
 0x2d6   : > { %v610_v29 = vmul.f32 0.35355338, %v606_v28 }
 0x2d7   : > { %v1023_v30 = vpop.f32.mrf.mxu1 }
 0x2d8   : > { %v611_v31 = vsel %vm203_vm1, %v610_v29, -inf }
 0x2d9   : > { %612 = vmax.xlane.f32.xlu0 %v611_v31  ;;  %v772_v32 = vpop.f32.mrf.mxu1 }
 0x2da   : > { %v776_v33 = vmul.f32 0.35355338, %v772_v32 }
 0x2db   : > { %v1033_v34 = vpop.f32.mrf.mxu1 }
 0x2dc   : > { %v777_v35 = vsel %vm203_vm1, %v776_v33, -inf }
 0x2dd   : > { %778 = vmax.xlane.f32.xlu1 %v777_v35 }
 0x35e   : > { %v446_v36 = vpop.xlane.xlu1 %445 }
 0x35f   : > { %v447_v37 = vsub.f32 %v443_v25, %v446_v36 }
 0x361   : > { %v448_v38 = vmul.f32 1.442695, %v447_v37 }
 0x362   : > { %v613_v39 = vpop.xlane.xlu0 %612 }
 0x363   : > { %1059 = vpow2.f32 %v448_v38  ;;  %v614_v40 = vsub.f32 %v610_v29, %v613_v39 }
 0x365   : > { %v615_v41 = vmul.f32 1.442695, %v614_v40 }
 0x366   : > { %v779_v46 = vpop.xlane.xlu1 %778 }
 0x367   : > { %1061 = vpow2.f32 %v615_v41  ;;  %v780_v47 = vsub.f32 %v776_v33, %v779_v46 }
 0x369   : > { %v781_v48 = vmul.f32 1.442695, %v780_v47 }
 0x36b   : > { %1063 = vpow2.f32 %v781_v48 }
 0x370   : > { %v1060_v42 = vpop.eup %1059 }
 0x371   : > { %v450_v43 = vsel %vm203_vm1, %v1060_v42, 0.0 }
 0x372   : > { %451 = vadd.xlane.f32.xlu1 %v450_v43 }
 0x374   : > { %v1062_v44 = vpop.eup %1061 }
 0x375   : > { %v617_v45 = vsel %vm203_vm1, %v1062_v44, 0.0 }
 0x376   : > { %618 = vadd.xlane.f32.xlu0 %v617_v45 }
 0x378   : > { %v1064_v49 = vpop.eup %1063 }
 0x379   : > { %v783_v50 = vsel %vm203_vm1, %v1064_v49, 0.0 }
 0x383   : > { %622 = vrot.lane.b32.xlu1 %v1147_v12, %s1082_s22 }
 0x38c   : > { %456 = vrot.lane.b32.xlu0 %v1147_v12, %s1081_s21 }
 0x3a7   : > { %784 = vadd.xlane.f32.xlu1 %v783_v50 }
 0x3b8   : > { %788 = vrot.lane.b32.xlu1 %v1147_v12, %s1083_s23 }
 0x3fb   : > { %v452_v51 = vpop.xlane.xlu1 %451 }
 0x3fc   : > { %1065 = vrcp.f32 %v452_v51 }
 0x3ff   : > { %v619_v52 = vpop.xlane.xlu0 %618  ;;  %v623_v56 = vpop.permute.xlu1 %622 }
 0x400   : > { %1067 = vrcp.f32 %v619_v52 }
 0x403   : > { %v457_v53 = vpop.permute.xlu0 %456 }
 0x404   : > { %1015 = vmatpush3.msra.mxu0 %v457_v53 }
 0x405   : > { %1024 = vmatprep.subr.mxu0 %v1079_v0 }
 0x409   : > { %v1066_v54 = vpop.eup %1065 }
 0x40a   : > { %v454_v55 = vmul.f32 %v1066_v54, %v1060_v42 }
 0x40c   : > { %1017 = vmatmul.mubr.msk.f32.vlgmr.msra.gmra.mxu0 %vm203_vm1, %v454_v55 }
 0x40d   : > { %v1068_v57 = vpop.eup %1067  ;;  %1025 = vmatpush3.msra.mxu0 %v623_v56  ;;  %1026 = vmatprep.mubr.msk.f32.mxu0 %vm1080_vm0, %v1079_v0 }
 0x40e   : > { %v621_v58 = vmul.f32 %v1068_v57, %v1062_v44  ;;  %1034 = vmatprep.subr.mxu0 %v1079_v0 }
 0x410   : > { %1027 = vmatmul.mubr.msk.f32.vlgmr.msra.gmra.mxu0 %vm203_vm1, %v621_v58 }
 0x411   : > { %1036 = vmatprep.mubr.msk.f32.mxu0 %vm1080_vm0, %v1079_v0 }
 0x430   : > { %v785_v59 = vpop.xlane.xlu1 %784 }
 0x431   : > { %1069 = vrcp.f32 %v785_v59 }
 0x434   : > { %v789_v60 = vpop.permute.xlu1 %788 }
 0x435   : > { %1035 = vmatpush3.msra.mxu0 %v789_v60 }
 0x43e   : > { %v1070_v61 = vpop.eup %1069 }
 0x43f   : > { %v787_v62 = vmul.f32 %v1070_v61, %v1064_v49 }
 0x441   : > { %1037 = vmatmul.mubr.msk.f32.vlgmr.msra.gmra.mxu0 %vm203_vm1, %v787_v62 }
 0x4cc   : > { %v528_v63 = vpop.f32.mrf.mxu0 }
 0x4cd   : > { %865 = vrot.lane.b32.xlu0 %v528_v63, %s1084_s27 }
 0x4ce   : > { %v1018_v1 = vpop.f32.mrf.mxu0 }
 0x4d0   : > { %v694_v2 = vpop.f32.mrf.mxu0 }
 0x4d1   : > { %869 = vrot.lane.b32.xlu1 %v694_v2, %s1085_s28 }
 0x4d2   : > { %v1028_v3 = vpop.f32.mrf.mxu0 }
 0x501   : > { %v860_v4 = vpop.f32.mrf.mxu0 }
 0x502   : > { %873 = vrot.lane.b32.xlu0 %v860_v4, %s1086_s29 }
 0x503   : > { %v1038_v0 = vpop.f32.mrf.mxu0 }
 0x53f   : > { %v866_v5 = vpop.permute.xlu0 %865 }
 0x540   : > { %v876_v7 = vsel %vm203_vm1, %v1167_v22, %v866_v5 }
 0x543   : > { %v870_v6 = vpop.permute.xlu1 %869 }
 0x544   : > { %v878_v8 = vsel %vm877_vm2, %v876_v7, %v870_v6 }
 0x574   : > { %v874_v9 = vpop.permute.xlu0 %873 }
 0x575   : > { %v880_v10 = vsel %vm879_vm3, %v878_v8, %v874_v9 }
 0x576   : > { %882 = vst.msk [vmem:[%s199_s5] sm:$0xff] %vm881_vm4, %v880_v10 }
 0x577 PF: > { %s13_s12 = sadd.s32 1, %s1077_s12  }
 0x578   : > { %p10_p4 = scmp.ge.s32.totalorder %s13_s12, 4  }
 0x57a   :  { %12 = sbr.rel (!%p10_p4) target bundleno = 1 (0x1), region = 68 }

// kernel: transformer_decoder_layer.11
= control target key start
LH: loop header
LB: loop body
LE: loop exit
PB: predicated region body
PF: predicated region fallthrough
CT: control target
= control target key end

     0   :  { %vm34_vm0 = vcmask 261120   ;;  %s204_s2 = inlined_call_operand.vmem [shape: f32[32,32], index: 2, kind: input, shape index: {}]   ;;  %s205_s0 = inlined_call_operand.vmem [shape: f32[16,32], index: 0, kind: input, shape index: {}]   ;;  %s206_s1 = inlined_call_operand.vmem [shape: f32[16,32], index: 1, kind: input, shape index: {}]   ;;  %s207_s3 = inlined_call_operand.vmem [shape: f32[1,32], index: 3, kind: input, shape index: {}]   ;;  %s208_s4 = inlined_call_operand.vmem [shape: f32[16,32], index: 4, kind: output, shape index: {}]  }
   0x1   :  { %v26_v0 = vld [vmem:[%s204_s2 + $0x18] sm:$0xff]  ;;  %v25_v1 = vld [vmem:[%s204_s2 + $0x10] sm:$0xff]  ;;  %v24_v2 = vld [vmem:[%s204_s2 + $0x8] sm:$0xff] }
   0x2   :  { %131 = vmatprep.subr.mxu0 %v26_v0  ;;  %v17_v3 = vld [vmem:[%s205_s0] sm:$0xff]  ;;  %v18_v4 = vld [vmem:[%s205_s0 + $0x8] sm:$0xff] }
   0x3   :  { %132 = vmatpush3.msra.mxu0 %v26_v0  ;;  %v19_v5 = vld [vmem:[%s206_s1] sm:$0xff]  ;;  %v20_v6 = vld [vmem:[%s206_s1 + $0x8] sm:$0xff] }
   0x4   :  { %133 = vmatprep.subr.mxu0 %v25_v1  ;;  %v21_v7 = vadd.f32 %v19_v5, %v17_v3  ;;  %v23_v8 = vld [vmem:[%s204_s2] sm:$0xff]  ;;  %v22_v9 = vadd.f32 %v20_v6, %v18_v4 }
   0x5   :  { %134 = vmatpush3.msra.mxu0 %v25_v1  ;;  %v122_v10 = vld [vmem:[%s207_s3] ss:$0 sm:$0xff] }
   0x6   :  { %135 = vmatprep.subr.mxu0 %v24_v2  ;;  %139 = vmatprep.mubr.msk.f32.mxu0 %vm34_vm0, %v21_v7 }
   0x7   :  { %136 = vmatpush3.msra.mxu0 %v24_v2 }
   0x8   :  { %137 = vmatprep.subr.mxu0 %v23_v8 }
   0x9   :  { %138 = vmatpush3.msra.mxu0 %v23_v8 }
   0xa   :  { %140 = vmatmul.mubr.msk.f32.vlgmr.msra.gmra.mxu0 %vm34_vm0, %v22_v9 }
  0xca   :  { %v141_v11 = vpop.f32.mrf.mxu0 }
  0xcb   :  { %v113_v12 = vadd.f32 %v141_v11, %v122_v10 }
  0xcc   :  { %v107_v13 = vpop.f32.mrf.mxu0 }
  0xcd   :  { %117 = vst.msk [vmem:[%s208_s4 + $0x8] sm:$0xff] %vm34_vm0, %v113_v12  ;;  %v108_v14 = vadd.f32 %v122_v10, %v107_v13 }
  0xcf   :  { %116 = vst.msk [vmem:[%s208_s4] sm:$0xff] %vm34_vm0, %v108_v14 }

// kernel: transformer_decoder_layer.15
= control target key start
LH: loop header
LB: loop body
LE: loop exit
PB: predicated region body
PF: predicated region fallthrough
CT: control target
= control target key end

     0   :  { %vm39_vm0 = vcmask 261120   ;;  %vm138_vm1 = vcmask 523264   ;;  %s439_s1 = inlined_call_operand.vmem [shape: f32[32,64], index: 1, kind: input, shape index: {}]   ;;  %s440_s0 = inlined_call_operand.vmem [shape: f32[16,32], index: 0, kind: input, shape index: {}]   ;;  %s441_s3 = inlined_call_operand.vmem [shape: f32[64,32], index: 3, kind: input, shape index: {}]   ;;  %s442_s2 = inlined_call_operand.vmem [shape: f32[1,64], index: 2, kind: input, shape index: {}]   ;;  %s443_s4 = inlined_call_operand.vmem [shape: f32[1,32], index: 4, kind: input, shape index: {}]   ;;  %s444_s5 = inlined_call_operand.vmem [shape: f32[1,32], index: 5, kind: input, shape index: {}]   ;;  %s445_s6 = inlined_call_operand.vmem [shape: f32[1,32], index: 6, kind: input, shape index: {}]   ;;  %s446_s7 = inlined_call_operand.vmem [shape: f32[16,32], index: 7, kind: output, shape index: {}]  }
   0x1   :  { %v31_v0 = vld [vmem:[%s439_s1 + $0x18] sm:$0xff]  ;;  %v30_v1 = vld [vmem:[%s439_s1 + $0x10] sm:$0xff]  ;;  %v26_v2 = vld [vmem:[%s440_s0] sm:$0xff] }
   0x2   :  { %297 = vmatprep.subr.mxu0 %v31_v0  ;;  %v29_v3 = vld [vmem:[%s439_s1 + $0x8] sm:$0xff]  ;;  %305 = vmatprep.mubr.msk.f32.mxu0 %vm39_vm0, %v26_v2  ;;  %v130_v4 = vld [vmem:[%s441_s3 + $0x38] sm:$0xff]  ;;  %v129_v5 = vld [vmem:[%s441_s3 + $0x30] sm:$0xff] }
   0x3   :  { %298 = vmatpush3.msra.mxu0 %v31_v0  ;;  %308 = vmatprep.subr.mxu1 %v130_v4  ;;  %v28_v6 = vld [vmem:[%s439_s1] sm:$0xff]  ;;  %v128_v7 = vld [vmem:[%s441_s3 + $0x28] sm:$0xff]  ;;  %v126_v10 = vld [vmem:[%s441_s3 + $0x18] sm:$0xff] }
   0x4   :  { %299 = vmatprep.subr.mxu0 %v30_v1  ;;  %309 = vmatpush3.msra.mxu1 %v130_v4  ;;  %v27_v8 = vld [vmem:[%s440_s0 + $0x8] sm:$0xff]  ;;  %v127_v9 = vld [vmem:[%s441_s3 + $0x20] sm:$0xff]  ;;  %v125_v11 = vld [vmem:[%s441_s3 + $0x10] sm:$0xff] }
   0x5   :  { %300 = vmatpush3.msra.mxu0 %v30_v1  ;;  %310 = vmatprep.subr.mxu1 %v129_v5  ;;  %v124_v12 = vld [vmem:[%s441_s3 + $0x8] sm:$0xff]  ;;  %v123_v13 = vld [vmem:[%s441_s3] sm:$0xff] }
   0x6   :  { %301 = vmatprep.subr.mxu0 %v29_v3  ;;  %311 = vmatpush3.msra.mxu1 %v129_v5  ;;  %v273_v14 = vld [vmem:[%s442_s2] ss:$0 sm:$0xff] }
   0x7   :  { %302 = vmatpush3.msra.mxu0 %v29_v3  ;;  %312 = vmatprep.subr.mxu1 %v128_v7  ;;  %v276_v22 = vld [vmem:[%s443_s4] ss:$0 sm:$0xff] }
   0x8   :  { %303 = vmatprep.subr.mxu0 %v28_v6  ;;  %313 = vmatpush3.msra.mxu1 %v128_v7  ;;  %v279_v47 = vld [vmem:[%s444_s5] ss:$0 sm:$0xff] }
   0x9   :  { %304 = vmatpush3.msra.mxu0 %v28_v6  ;;  %314 = vmatprep.subr.mxu1 %v127_v9  ;;  %v280_v49 = vld [vmem:[%s445_s6] ss:$0 sm:$0xff] }
   0xa   :  { %306 = vmatmul.mubr.msk.f32.vlgmr.msra.gmra.mxu0 %vm39_vm0, %v27_v8  ;;  %315 = vmatpush3.msra.mxu1 %v127_v9 }
   0xb   :  { %316 = vmatprep.subr.mxu1 %v126_v10 }
   0xc   :  { %317 = vmatpush3.msra.mxu1 %v126_v10 }
   0xd   :  { %318 = vmatprep.subr.mxu1 %v125_v11 }
   0xe   :  { %319 = vmatpush3.msra.mxu1 %v125_v11 }
   0xf   :  { %320 = vmatprep.subr.mxu1 %v124_v12 }
  0x10   :  { %321 = vmatpush3.msra.mxu1 %v124_v12 }
  0x11   :  { %322 = vmatprep.subr.mxu1 %v123_v13 }
  0x12   :  { %323 = vmatpush3.msra.mxu1 %v123_v13 }
  0xca   :  { %v307_v15 = vpop.f32.mrf.mxu0 }
  0xcb   :  { %v118_v16 = vadd.f32 %v307_v15, %v273_v14 }
  0xcc   :  { %v112_v17 = vpop.f32.mrf.mxu0 }
  0xcd   :  { %v113_v18 = vadd.f32 %v273_v14, %v112_v17  ;;  %v122_v20 = vmax.f32 %v118_v16, 0.0 }
  0xcf   :  { %v121_v19 = vmax.f32 %v113_v18, 0.0 }
  0xd1   :  { %324 = vmatprep.mubr.msk.f32.mxu1 %vm138_vm1, %v121_v19 }
  0xd2   :  { %325 = vmatmul.mubr.msk.f32.vlgmr.msra.gmra.mxu1 %vm138_vm1, %v122_v20 }
 0x192   :  { %v326_v21 = vpop.f32.mrf.mxu1 }
 0x193   :  { %v217_v24 = vadd.f32 %v326_v21, %v276_v22 }
 0x194   :  { %v211_v23 = vpop.f32.mrf.mxu1 }
 0x195   :  { %v212_v25 = vadd.f32 %v276_v22, %v211_v23  ;;  %v221_v28 = vadd.f32 %v217_v24, %v27_v8 }
 0x197   :  { %v220_v26 = vadd.f32 %v212_v25, %v26_v2  ;;  %v225_v29 = vsel %vm39_vm0, %v221_v28, 0.0 }
 0x199   :  { %v222_v27 = vsel %vm39_vm0, %v220_v26, 0.0 }
 0x19a   :  { %223 = vadd.xlane.f32.xlu0 %v222_v27 }
 0x19e   :  { %226 = vadd.xlane.f32.xlu0 %v225_v29 }
 0x223   :  { %v224_v30 = vpop.xlane.xlu0 %223 }
 0x224   :  { %v229_v31 = vmul.f32 0.03125, %v224_v30 }
 0x226   :  { %v231_v32 = vsub.f32 %v220_v26, %v229_v31 }
 0x227   :  { %v227_v33 = vpop.xlane.xlu0 %226 }
 0x228   :  { %v230_v34 = vmul.f32 0.03125, %v227_v33  ;;  %v233_v35 = vmul.f32 %v231_v32, %v231_v32 }
 0x22a   :  { %v232_v36 = vsub.f32 %v221_v28, %v230_v34  ;;  %v235_v37 = vsel %vm39_vm0, %v233_v35, 0.0 }
 0x22b   :  { %236 = vadd.xlane.f32.xlu1 %v235_v37 }
 0x22c   :  { %v234_v38 = vmul.f32 %v232_v36, %v232_v36 }
 0x22e   :  { %v238_v39 = vsel %vm39_vm0, %v234_v38, 0.0 }
 0x22f   :  { %239 = vadd.xlane.f32.xlu1 %v238_v39 }
 0x2b4   :  { %v237_v40 = vpop.xlane.xlu1 %236 }
 0x2b5   :  { %v241_v41 = vmul.f32 0.03125, %v237_v40 }
 0x2b7   :  { %v243_v42 = vadd.f32 1e-05, %v241_v41 }
 0x2b8   :  { %v240_v43 = vpop.xlane.xlu1 %239 }
 0x2b9   :  { %327 = vrsqrt.f32 %v243_v42  ;;  %v242_v44 = vmul.f32 0.03125, %v240_v43 }
 0x2bb   :  { %v244_v45 = vadd.f32 1e-05, %v242_v44 }
 0x2bd   :  { %329 = vrsqrt.f32 %v244_v45 }
 0x2c6   :  { %v328_v46 = vpop.eup %327 }
 0x2c7   :  { %v247_v48 = vmul.f32 %v328_v46, %v231_v32 }
 0x2c9   :  { %v256_v50 = vmul.f32 %v279_v47, %v247_v48 }
 0x2ca   :  { %v330_v51 = vpop.eup %329 }
 0x2cb   :  { %v265_v52 = vadd.f32 %v280_v49, %v256_v50  ;;  %v248_v53 = vmul.f32 %v330_v51, %v232_v36 }
 0x2cd   :  { %267 = vst.msk [vmem:[%s446_s7] sm:$0xff] %vm39_vm0, %v265_v52  ;;  %v257_v54 = vmul.f32 %v279_v47, %v248_v53 }
 0x2cf   :  { %v266_v55 = vadd.f32 %v280_v49, %v257_v54 }
 0x2d1   :  { %268 = vst.msk [vmem:[%s446_s7 + $0x8] sm:$0xff] %vm39_vm0, %v266_v55 }

// kernel: transformer_decoder_layer.13
= control target key start
LH: loop header
LB: loop body
LE: loop exit
PB: predicated region body
PF: predicated region fallthrough
CT: control target
= control target key end

     0   :  { %s1172_s12 = smov 0   ;;  %s1313_s0 = inlined_call_operand.vmem [shape: f32[2,8,32], index: 0, kind: input, shape index: {}]   ;;  %s1314_s1 = inlined_call_operand.vmem [shape: f32[2,16,32], index: 1, kind: input, shape index: {}]   ;;  %s1315_s2 = inlined_call_operand.vmem [shape: f32[2,16,32], index: 2, kind: input, shape index: {}]   ;;  %s1316_s3 = inlined_call_operand.vmem [shape: f32[2,8,32], index: 3, kind: output, shape index: {}]  }
   0x1 LB: > { %s993_s13 = sadd.s32 4294967295, %s1142_s12   ;;  %p997_p0 = scmp.ge.s32.totalorder %s1142_s12, 1  ;;  %s1142_s12 = sphi %s1172_s12, %s13_s12  }
   0x2   : > { %p156_p1 = scmp.lt.s32.totalorder %s1142_s12, 3 }
   0x4   : > { %p157_p2 = pnand %p997_p0, %p156_p1 }
   0x5   : > { %p188_p3 = scmp.lt.s32.totalorder (!%p157_p2), %s993_s13, 1  ;;  %s1146_s22 = smov (!%p157_p2), 120  }
   0x6   : > { %160 = sbr.rel (%p157_p2) target bundleno = 2384 (0x950), region = 32  ;;  %s1147_s26 = smov (!%p157_p2), 112  }
   0x7   : > { %s1148_s27 = smov (!%p157_p2), 104   ;;  %s1149_s28 = smov (!%p157_p2), 8  }
   0x8   : > { %s1150_s29 = smov (!%p157_p2), 16   ;;  %s1151_s30 = smov (!%p157_p2), 24  }
   0xb   : > { %v1144_v0 = vmov 0.0   ;;  %vm1145_vm0 = vmmov 0   ;;  %s1318_s13 = smov (!%p188_p3, %s993_s13), 1  ;;  %vm211_vm1 = vcmask 64512   ;;  %vm292_vm2 = vcmask 130048  }
   0xc   : > { %1048 = vmatprep.subr.mxu0 %v1144_v0  ;;  %1052 = vmatprep.mubr.msk.f32.mxu0 %vm1145_vm0, %v1144_v0  ;;  %s1022_s14 = sshll.u32 %s1318_s13, 4  ;;  %s998_s18 = sshll.u32 %s1318_s13, 3  ;;  %vm912_vm3 = vcmask 195584   ;;  %vm914_vm4 = vcmask 261120  }
   0xd   : > { %1055 = vmatprep.subr.mxu1 %v1144_v0  ;;  %1059 = vmatprep.mubr.msk.f32.mxu1 %vm1145_vm0, %v1144_v0  ;;  %s196_s17 = scalar_lea.vmem %s1314_s1, %s1022_s14  ;;  %s191_s21 = scalar_lea.vmem %s1313_s0, %s998_s18 }
   0xe   : > { %v1195_v1 = vld [vmem:[%s196_s17 + $0x8] sm:$0xff]  ;;  %v1200_v2 = vld [vmem:[%s196_s17] sm:$0xff]  ;;  %s201_s25 = scalar_lea.vmem %s1315_s2, %s1022_s14  ;;  %s205_s6 = scalar_lea.vmem %s1316_s3, %s998_s18 }
   0xf   : > { %1049 = vmatpush3.xpose.msk.msra.mxu0 %vm211_vm1, %v1195_v1  ;;  %v1209_v3 = vld [vmem:[%s191_s21] sm:$0xff]  ;;  %381 = vrot.lane.b32.xlu1 %v1195_v1, %s1146_s22  ;;  %v1227_v13 = vld [vmem:[%s201_s25 + $0x8] sm:$0xff] }
  0x10   : > { %1050 = vmatprep.subr.mxu0 %v1144_v0  ;;  %v1229_v14 = vld [vmem:[%s201_s25] sm:$0xff]  ;;  %1056 = vmatpush3.msra.mxu1 %v1227_v13 }
  0x11   : > { %1057 = vmatprep.subr.mxu1 %v1144_v0 }
  0x12   : > { %1058 = vmatpush3.msra.mxu1 %v1229_v14 }
  0x13   : > { %1051 = vmatpush3.xpose.msk.msra.mxu0 %vm211_vm1, %v1200_v2  ;;  %379 = vrot.lane.b32.xlu1 %v1200_v2, %s1146_s22 }
  0x14   : > { %1069 = vmatprep.subr.mxu0 %v1144_v0  ;;  %1062 = vmatprep.subr.mxu1 %v1144_v0 }
  0x16   : > { %1053 = vmatmul.mubr.msk.f32.vlgmr.msra.gmra.mxu0 %vm211_vm1, %v1209_v3 }
  0x17   : > { %1073 = vmatprep.mubr.msk.f32.mxu0 %vm1145_vm0, %v1144_v0 }
  0x81   : > { %v382_v16 = vpop.permute.xlu1 %381 }
  0x85   : > { %v380_v19 = vpop.permute.xlu1 %379 }
  0xd6   : > { %v287_v4 = vpop.f32.mrf.mxu0 }
  0xd7   : > { %v291_v5 = vmul.f32 0.35355338, %v287_v4 }
  0xd8   : > { %v1054_v6 = vpop.f32.mrf.mxu0 }
  0xd9   : > { %v293_v7 = vsel %vm292_vm2, %v291_v5, -inf }
  0xda   : > { %294 = vmax.xlane.f32.xlu0 %v293_v7 }
 0x163   : > { %v295_v8 = vpop.xlane.xlu0 %294 }
 0x164   : > { %v296_v9 = vsub.f32 %v291_v5, %v295_v8 }
 0x166   : > { %v297_v10 = vmul.f32 1.442695, %v296_v9 }
 0x168   : > { %1120 = vpow2.f32 %v297_v10 }
 0x175   : > { %v1121_v11 = vpop.eup %1120 }
 0x176   : > { %v299_v12 = vsel %vm292_vm2, %v1121_v11, 0.0 }
 0x177   : > { %300 = vadd.xlane.f32.xlu0 %v299_v12 }
 0x18d   : > { %377 = vrot.lane.b32.xlu0 %v1209_v3, %s1146_s22 }
 0x200   : > { %v301_v15 = vpop.xlane.xlu0 %300 }
 0x201   : > { %1122 = vrcp.f32 %v301_v15 }
 0x204   : > { %v378_v20 = vpop.permute.xlu0 %377 }
 0x20e   : > { %v1123_v17 = vpop.eup %1122 }
 0x20f   : > { %v303_v18 = vmul.f32 %v1123_v17, %v1121_v11 }
 0x211   : > { %1060 = vmatmul.mubr.msk.f32.vlgmr.msra.gmra.mxu1 %vm292_vm2, %v303_v18 }
 0x212   : > { %1063 = vmatpush3.xpose.msk.msra.mxu1 %vm211_vm1, %v382_v16  ;;  %1066 = vmatprep.mubr.msk.f32.mxu1 %vm1145_vm0, %v1144_v0 }
 0x213   : > { %1064 = vmatprep.subr.mxu1 %v1144_v0 }
 0x216   : > { %1065 = vmatpush3.xpose.msk.msra.mxu1 %vm211_vm1, %v380_v19 }
 0x217   : > { %1083 = vmatprep.subr.mxu1 %v1144_v0 }
 0x219   : > { %1067 = vmatmul.mubr.msk.f32.vlgmr.msra.gmra.mxu1 %vm211_vm1, %v378_v20 }
 0x21a   : > { %1087 = vmatprep.mubr.msk.f32.mxu1 %vm1145_vm0, %v1144_v0 }
 0x2d1   : > { %v1247_v21 = vpop.f32.mrf.mxu1 }
 0x2d3   : > { %v1061_v22 = vpop.f32.mrf.mxu1 }
 0x2d9   : > { %v455_v23 = vpop.f32.mrf.mxu1 }
 0x2da   : > { %v459_v24 = vmul.f32 0.35355338, %v455_v23 }
 0x2db   : > { %v1068_v25 = vpop.f32.mrf.mxu1 }
 0x2dc   : > { %v460_v26 = vsel %vm292_vm2, %v459_v24, -inf }
 0x2dd   : > { %461 = vmax.xlane.f32.xlu1 %v460_v26 }
 0x2ee   : > { %475 = vrot.lane.b32.xlu1 %v1227_v13, %s1146_s22 }
 0x2f2   : > { %556 = vrot.lane.b32.xlu1 %v1195_v1, %s1147_s26 }
 0x2f6   : > { %554 = vrot.lane.b32.xlu1 %v1200_v2, %s1147_s26 }
 0x2fa   : > { %552 = vrot.lane.b32.xlu1 %v1209_v3, %s1147_s26 }
 0x366   : > { %v462_v27 = vpop.xlane.xlu1 %461 }
 0x367   : > { %v463_v28 = vsub.f32 %v459_v24, %v462_v27 }
 0x369   : > { %v464_v29 = vmul.f32 1.442695, %v463_v28 }
 0x36a   : > { %v476_v32 = vpop.permute.xlu1 %475 }
 0x36b   : > { %1124 = vpow2.f32 %v464_v29  ;;  %1070 = vmatpush3.msra.mxu0 %v476_v32 }
 0x36c   : > { %1071 = vmatprep.subr.mxu0 %v1144_v0 }
 0x36e   : > { %v557_v35 = vpop.permute.xlu1 %556 }
 0x372   : > { %v555_v38 = vpop.permute.xlu1 %554 }
 0x376   : > { %v553_v39 = vpop.permute.xlu1 %552 }
 0x378   : > { %v1125_v30 = vpop.eup %1124 }
 0x379   : > { %v466_v31 = vsel %vm292_vm2, %v1125_v30, 0.0 }
 0x37a   : > { %467 = vadd.xlane.f32.xlu0 %v466_v31 }
 0x390   : > { %473 = vrot.lane.b32.xlu0 %v1229_v14, %s1146_s22 }
 0x403   : > { %v468_v33 = vpop.xlane.xlu0 %467 }
 0x404   : > { %1126 = vrcp.f32 %v468_v33 }
 0x407   : > { %v474_v34 = vpop.permute.xlu0 %473 }
 0x408   : > { %1072 = vmatpush3.msra.mxu0 %v474_v34 }
 0x409   : > { %1076 = vmatprep.subr.mxu0 %v1144_v0 }
 0x411   : > { %v1127_v36 = vpop.eup %1126 }
 0x412   : > { %v470_v37 = vmul.f32 %v1127_v36, %v1125_v30 }
 0x414   : > { %1074 = vmatmul.mubr.msk.f32.vlgmr.msra.gmra.mxu0 %vm292_vm2, %v470_v37 }
 0x415   : > { %1077 = vmatpush3.xpose.msk.msra.mxu0 %vm211_vm1, %v557_v35  ;;  %1080 = vmatprep.mubr.msk.f32.mxu0 %vm1145_vm0, %v1144_v0 }
 0x416   : > { %1078 = vmatprep.subr.mxu0 %v1144_v0 }
 0x419   : > { %1079 = vmatpush3.xpose.msk.msra.mxu0 %vm211_vm1, %v555_v38 }
 0x41a   : > { %1097 = vmatprep.subr.mxu0 %v1144_v0 }
 0x41c   : > { %1081 = vmatmul.mubr.msk.f32.vlgmr.msra.gmra.mxu0 %vm211_vm1, %v553_v39 }
 0x41d   : > { %1101 = vmatprep.mubr.msk.f32.mxu0 %vm1145_vm0, %v1144_v0 }
 0x4d4   : > { %v548_v40 = vpop.f32.mrf.mxu0 }
 0x4d6   : > { %v1075_v41 = vpop.f32.mrf.mxu0 }
 0x4dc   : > { %v630_v42 = vpop.f32.mrf.mxu0 }
 0x4dd   : > { %v634_v43 = vmul.f32 0.35355338, %v630_v42 }
 0x4de   : > { %v1082_v44 = vpop.f32.mrf.mxu0 }
 0x4df   : > { %v635_v45 = vsel %vm292_vm2, %v634_v43, -inf }
 0x4e0   : > { %636 = vmax.xlane.f32.xlu1 %v635_v45 }
 0x4f1   : > { %648 = vrot.lane.b32.xlu1 %v1227_v13, %s1147_s26 }
 0x4f5   : > { %729 = vrot.lane.b32.xlu1 %v1195_v1, %s1148_s27 }
 0x4f9   : > { %727 = vrot.lane.b32.xlu1 %v1200_v2, %s1148_s27 }
 0x4fd   : > { %725 = vrot.lane.b32.xlu1 %v1209_v3, %s1148_s27 }
 0x569   : > { %v637_v46 = vpop.xlane.xlu1 %636 }
 0x56a   : > { %v638_v47 = vsub.f32 %v634_v43, %v637_v46 }
 0x56c   : > { %v639_v48 = vmul.f32 1.442695, %v638_v47 }
 0x56d   : > { %v649_v51 = vpop.permute.xlu1 %648 }
 0x56e   : > { %1128 = vpow2.f32 %v639_v48  ;;  %1084 = vmatpush3.msra.mxu1 %v649_v51 }
 0x56f   : > { %1085 = vmatprep.subr.mxu1 %v1144_v0 }
 0x571   : > { %v730_v54 = vpop.permute.xlu1 %729 }
 0x575   : > { %v728_v57 = vpop.permute.xlu1 %727 }
 0x579   : > { %v726_v58 = vpop.permute.xlu1 %725 }
 0x57b   : > { %v1129_v49 = vpop.eup %1128 }
 0x57c   : > { %v641_v50 = vsel %vm292_vm2, %v1129_v49, 0.0 }
 0x57d   : > { %642 = vadd.xlane.f32.xlu0 %v641_v50 }
 0x593   : > { %646 = vrot.lane.b32.xlu0 %v1229_v14, %s1147_s26 }
 0x606   : > { %v643_v52 = vpop.xlane.xlu0 %642 }
 0x607   : > { %1130 = vrcp.f32 %v643_v52 }
 0x60a   : > { %v647_v53 = vpop.permute.xlu0 %646 }
 0x60b   : > { %1086 = vmatpush3.msra.mxu1 %v647_v53 }
 0x60c   : > { %1090 = vmatprep.subr.mxu1 %v1144_v0 }
 0x614   : > { %v1131_v55 = vpop.eup %1130 }
 0x615   : > { %v645_v56 = vmul.f32 %v1131_v55, %v1129_v49 }
 0x617   : > { %1088 = vmatmul.mubr.msk.f32.vlgmr.msra.gmra.mxu1 %vm292_vm2, %v645_v56 }
 0x618   : > { %1091 = vmatpush3.xpose.msk.msra.mxu1 %vm211_vm1, %v730_v54  ;;  %1094 = vmatprep.mubr.msk.f32.mxu1 %vm1145_vm0, %v1144_v0 }
 0x619   : > { %1092 = vmatprep.subr.mxu1 %v1144_v0 }
 0x61c   : > { %1093 = vmatpush3.xpose.msk.msra.mxu1 %vm211_vm1, %v728_v57 }
 0x61f   : > { %1095 = vmatmul.mubr.msk.f32.vlgmr.msra.gmra.mxu1 %vm211_vm1, %v726_v58 }
 0x6d7   : > { %v721_v59 = vpop.f32.mrf.mxu1 }
 0x6d9   : > { %v1089_v60 = vpop.f32.mrf.mxu1 }
 0x6df   : > { %v803_v61 = vpop.f32.mrf.mxu1 }
 0x6e0   : > { %v807_v62 = vmul.f32 0.35355338, %v803_v61 }
 0x6e1   : > { %v1096_v63 = vpop.f32.mrf.mxu1 }
 0x6e2   : > { %v808_v1 = vsel %vm292_vm2, %v807_v62, -inf }
 0x6e3   : > { %809 = vmax.xlane.f32.xlu0 %v808_v1 }
 0x6f9   : > { %821 = vrot.lane.b32.xlu0 %v1227_v13, %s1148_s27 }
 0x6fd   : > { %899 = vrot.lane.b32.xlu0 %v548_v40, %s1149_s28 }
 0x76c   : > { %v810_v2 = vpop.xlane.xlu0 %809 }
 0x76d   : > { %v811_v3 = vsub.f32 %v807_v62, %v810_v2 }
 0x76f   : > { %v812_v4 = vmul.f32 1.442695, %v811_v3 }
 0x770   : > { %v822_v5 = vpop.permute.xlu0 %821 }
 0x771   : > { %1132 = vpow2.f32 %v812_v4  ;;  %1098 = vmatpush3.msra.mxu0 %v822_v5 }
 0x772   : > { %1099 = vmatprep.subr.mxu0 %v1144_v0 }
 0x774   : > { %v900_v13 = vpop.permute.xlu0 %899 }
 0x77e   : > { %v1133_v6 = vpop.eup %1132 }
 0x77f   : > { %v814_v7 = vsel %vm292_vm2, %v1133_v6, 0.0 }
 0x780   : > { %815 = vadd.xlane.f32.xlu1 %v814_v7 }
 0x791   : > { %819 = vrot.lane.b32.xlu1 %v1229_v14, %s1148_s27  ;;  %v910_v14 = vsel %vm211_vm1, %v1247_v21, %v900_v13 }
 0x795   : > { %903 = vrot.lane.b32.xlu1 %v721_v59, %s1150_s29 }
 0x809   : > { %v816_v8 = vpop.xlane.xlu1 %815 }
 0x80a   : > { %1134 = vrcp.f32 %v816_v8 }
 0x80d   : > { %v820_v9 = vpop.permute.xlu1 %819 }
 0x80e   : > { %1100 = vmatpush3.msra.mxu0 %v820_v9 }
 0x811   : > { %v904_v15 = vpop.permute.xlu1 %903 }
 0x812   : > { %v911_v16 = vsel %vm292_vm2, %v910_v14, %v904_v15 }
 0x817   : > { %v1135_v10 = vpop.eup %1134 }
 0x818   : > { %v818_v11 = vmul.f32 %v1135_v10, %v1133_v6 }
 0x81a   : > { %1102 = vmatmul.mubr.msk.f32.vlgmr.msra.gmra.mxu0 %vm292_vm2, %v818_v11 }
 0x8da   : > { %v894_v12 = vpop.f32.mrf.mxu0 }
 0x8db   : > { %907 = vrot.lane.b32.xlu0 %v894_v12, %s1151_s30 }
 0x8dc   : > { %v1103_v0 = vpop.f32.mrf.mxu0 }
 0x94d   : > { %v908_v17 = vpop.permute.xlu0 %907 }
 0x94e   : > { %v913_v18 = vsel %vm912_vm3, %v911_v16, %v908_v17 }
 0x94f   : > { %915 = vst.msk [vmem:[%s205_s6] sm:$0xff] %vm914_vm4, %v913_v18 }
 0x950 PF: > { %s13_s12 = sadd.s32 1, %s1142_s12  }
 0x951   : > { %p10_p4 = scmp.ge.s32.totalorder %s13_s12, 4  }
 0x953   :  { %12 = sbr.rel (!%p10_p4) target bundleno = 1 (0x1), region = 68 }

</bundles_post_ra>
